<compile_context>
chip_gen: v6e
topology: v6e:2x2x1
jax: 0.10.0
libtpu: 0.0.40
codegen_flags: <defaults>
</compile_context>

<pallas_src>
import functools

import numpy as np
import jax
import jax.numpy as jnp
from jax.experimental import pallas as pl
from jax.experimental.pallas import tpu as pltpu

# ----------------------- hyper-parameters (consistent with module) -----------
NUM_ENT = 40          # p.num_ent
NUM_REL = 5           # p.num_rel  (init_rel has 2*num_rel rows)
EMBED_DIM = 32        # p.embed_dim
NUM_FACTORS = 3       # p.num_factors (K)
K_W = 8               # p.k_w
K_H = 4               # p.k_h   (embed_dim == k_w * k_h)
KER_SZ = 3            # p.ker_sz
NUM_FILT = 4          # p.num_filt
PROMPT_LEN = 2        # p.prompt_length
MODEL_DIM = 16        # plm hidden_size
NUM_LAYERS = 2        # plm num_hidden_layers
PROMPT_HID = 24       # p.prompt_hidden_dim
BATCH = 12
LEAKY_SLOPE = 0.2
BN_EPS = 1e-5

FLAT_H = 2 * K_W - KER_SZ + 1            # 14
FLAT_W = K_H - KER_SZ + 1                # 2
FLAT_SZ = FLAT_H * FLAT_W * NUM_FILT     # 112
HALF = 2 * K_W                           # 16 == one ConvE image column (D // 2)
IMG_SZ = 2 * EMBED_DIM                   # 64 == flattened ConvE input per (batch, factor)
KD = NUM_FACTORS * EMBED_DIM             # 96
PM = PROMPT_LEN * MODEL_DIM              # 32
LPM = NUM_LAYERS * PM                    # 64
N_PAD = -(-NUM_ENT // 128) * 128         # entity dim padded lane-dense (128)
B_TILE = 8                               # one full sublane group per grid step

assert K_W * K_H == EMBED_DIM and K_H == 4, "image-column layout assumes k_h == 4"


def _surrogate_slot_map():
    """Static (embed_input slot, prompter_w2 column offset) pairs reproducing the raw torch
    .view order: prompt_flat (B*(K+1), M*L*P) -> (B, L, (K+1)*P, M), layer L-1, chunked into
    K+1 targets of P rows each (targets 0..K-1 are sub factors, target K is the relation)."""
    slots = []
    for t in range(NUM_FACTORS + 1):
        start = (NUM_LAYERS - 1) * (NUM_FACTORS + 1) * PM + t * PM
        slots.append((start // LPM, start % LPM))
    return tuple(slots)


# ---- static im2col scatter pattern (host-side, built once at import time) -------------------
# ConvE image columns (stk_inp layout): col0 = e_even, col1 = r_even, col2 = e_odd, col3 = r_odd
# Kernel input vector layout v = [e_even | e_odd | r_even | r_odd]  (llm_fc cols pre-permuted).
_COL_BASE = {0: 0, 1: 2 * HALF, 2: HALF, 3: 3 * HALF}


def _conv_scatter():
    s = np.zeros((NUM_FILT * KER_SZ * KER_SZ, IMG_SZ, FLAT_SZ), np.float32)
    for f in range(NUM_FILT):
        for ki in range(KER_SZ):
            for kj in range(KER_SZ):
                w = (f * KER_SZ + ki) * KER_SZ + kj
                for i in range(FLAT_H):
                    for j in range(FLAT_W):
                        p = _COL_BASE[j + kj] + (i + ki)           # input-vector position
                        o = (f * FLAT_H + i) * FLAT_W + j          # torch flatten order (f,i,j)
                        s[w, p, o] = 1.0
    return s


_CONV_SCATTER = _conv_scatter()


# ----------------------------- fused forward kernel --------------------------
def _fused_forward_kernel(sub_idx_ref, rel_idx_ref,
                          init_embed_ref, init_rel_ref, init_embed_t_ref,
                          pca_w_ref, pca_wt_ref, pca_b_row_ref, pca_b_col_ref,
                          w1_ref, w2_ref, llm_w_ref, llm_b_ref,
                          conv_mat_ref, conv_b_ref, fc_w_ref, fc_b_ref, ent_bias_ref,
                          o_ref,
                          sub_buf, rel_buf,
                          *, slot_map):
    g = pl.program_id(0)
    BT = o_ref.shape[0]
    D, K = EMBED_DIM, NUM_FACTORS
    dot = functools.partial(jnp.dot, preferred_element_type=jnp.float32)

    # ---- gather this tile's sub / rel embedding rows via SMEM-prefetched indices ----
    for b in range(BT):
        si = sub_idx_ref[g * BT + b]
        ri = rel_idx_ref[g * BT + b]
        sub_buf[pl.ds(b, 1), :] = init_embed_ref[pl.ds(si, 1), :]
        rel_buf[pl.ds(b, 1), :] = init_rel_ref[pl.ds(ri, 1), :]
    sub_rows = sub_buf[...]                                         # (BT, D)
    rel_rows = rel_buf[...]                                         # (BT, D)  rel_emb_single

    # ---- CapsuleBase.test_base: factorised embeddings (gcn_layer = 0 identity) ------
    # all entities, already transposed & lane-dense for the final NN scoring dot
    all_ent_t = jnp.tanh(dot(pca_wt_ref[...], init_embed_t_ref[...])
                         + pca_b_col_ref[...])                      # (K*D, N_pad)
    # this tile's queries: tanh(pca(init_embed))[sub] == tanh(pca(init_embed[sub]))
    sub_kd = jnp.tanh(dot(sub_rows, pca_w_ref[...]) + pca_b_row_ref[...])   # (BT, K*D)

    # ---- Prompter (surrogate frozen PLM): needed slots stacked along sublanes -------
    needed = sorted({s for s, _ in slot_map})
    pos = {s: i for i, s in enumerate(needed)}
    pin = jnp.concatenate(
        [sub_kd[:, s * D:(s + 1) * D] if s < K else rel_rows for s in needed],
        axis=0)                                                     # (len(needed)*BT, D)
    h = jnp.maximum(dot(pin, w1_ref[...]), 0.0)                     # (len(needed)*BT, HID)
    st = dot(h, w2_ref[...])                                        # (len(needed)*BT, L*P*M)

    # one stacked llm_fc matmul over all K+1 targets; output columns are [even | odd]
    states = jnp.concatenate(
        [st[pos[s] * BT:(pos[s] + 1) * BT, c0:c0 + PM] for s, c0 in slot_map],
        axis=0)                                                     # ((K+1)*BT, P*M)
    eo = dot(states, llm_w_ref[...]) + llm_b_ref[...]               # ((K+1)*BT, D)
    r_eo = eo[K * BT:(K + 1) * BT, :]                               # (BT, D)  plm_rel_embed

    # ---- attention = softmax_k(leakyrelu(<plm_sub_k, plm_rel>)) ----------------------
    zs = []
    for k in range(K):
        z = jnp.sum(eo[k * BT:(k + 1) * BT, :] * r_eo, axis=-1, keepdims=True)   # (BT, 1)
        zs.append(jnp.maximum(z, LEAKY_SLOPE * z))                  # leaky relu (slope < 1)
    zmax = zs[0]
    for k in range(1, K):
        zmax = jnp.maximum(zmax, zs[k])
    ez = [jnp.exp(z - zmax) for z in zs]
    denom = ez[0]
    for k in range(1, K):
        denom = denom + ez[k]
    inv_denom = 1.0 / denom     # exact -> the single entity-bias add below stays exact

    # ---- ConvE tower: two factor-stacked MXU matmuls (im2col + fc, bn0/bn1/bn2 folded)
    v = jnp.concatenate([eo[0:K * BT, :],
                         jnp.concatenate([r_eo] * K, axis=0)], axis=1)     # (K*BT, 2D)
    cf = jnp.maximum(dot(v, conv_mat_ref[...]) + conv_b_ref[...], 0.0)     # (K*BT, 112)
    y = jnp.maximum(dot(cf, fc_w_ref[...]) + fc_b_ref[...], 0.0)           # (K*BT, D)

    # ---- attention-scale, concat in registers, single lane-dense NN scoring dot -----
    xs = jnp.concatenate(
        [(ez[k] * inv_denom) * y[k * BT:(k + 1) * BT, :] for k in range(K)],
        axis=1)                                                     # (BT, K*D)
    o_ref[...] = dot(xs, all_ent_t) + ent_bias_ref[...]             # (BT, N_pad)


# ---------------------------------- host-side folding -----------------------------------------
def _bn_fold(g, b, m, v):
    s = g / jnp.sqrt(v + BN_EPS)
    return s, b - m * s


def fold_params(params):
    """One-time eval-mode folding, run at model-load time (NOT per forward call)."""
    bn0_s, bn0_sh = _bn_fold(params["bn0_g"], params["bn0_b"], params["bn0_m"], params["bn0_v"])
    bn1_s, bn1_sh = _bn_fold(params["bn1_g"], params["bn1_b"], params["bn1_m"], params["bn1_v"])
    bn2_s, bn2_sh = _bn_fold(params["bn2_g"], params["bn2_b"], params["bn2_m"], params["bn2_v"])

    # bn0 + bn1 folded into a dense im2col conv matrix + a per-output bias row
    conv_w = params["conv_w"]                                              # (F, 3, 3), bias=False
    w_eff = (conv_w * (bn0_s * bn1_s)[:, None, None]).reshape(-1)          # (F*9,)
    conv_mat = jnp.einsum("w,wpo->po", w_eff, jnp.asarray(_CONV_SCATTER))  # (64, 112)
    conv_bias_f = bn1_s * bn0_sh * jnp.sum(conv_w, axis=(1, 2)) + bn1_sh   # (F,)
    conv_bias = jnp.repeat(conv_bias_f, FLAT_H * FLAT_W).reshape(1, FLAT_SZ)

    # bn2 folded into fc (rows already in torch flatten order (f, i, j))
    fc_w = params["fc_w"] * bn2_s[None, :]
    fc_b = (params["fc_b"] * bn2_s + bn2_sh).reshape(1, EMBED_DIM)

    # llm_fc output columns permuted to [even | odd] -> ConvE image columns come out de-interleaved
    llm_w = jnp.concatenate([params["llm_fc_w"][:, 0::2], params["llm_fc_w"][:, 1::2]], axis=1)
    llm_b = jnp.concatenate([params["llm_fc_b"][:, 0::2], params["llm_fc_b"][:, 1::2]], axis=1)

    # entity table transposed + padded lane-dense for the NN scoring matmul
    init_embed_t = jnp.zeros((EMBED_DIM, N_PAD), jnp.float32).at[:, :NUM_ENT].set(
        params["init_embed"].T)
    ent_bias = jnp.zeros((1, N_PAD), jnp.float32).at[:, :NUM_ENT].set(params["ent_bias"])

    return {
        "init_embed": params["init_embed"],
        "init_rel": params["init_rel"],
        "init_embed_t": init_embed_t,
        "pca_w": params["pca_w"],
        "pca_w_t": params["pca_w"].T,
        "pca_b_row": params["pca_b"],
        "pca_b_col": params["pca_b"].T,
        "prompter_w1": params["prompter_w1"],
        "prompter_w2": params["prompter_w2"],
        "llm_w": llm_w, "llm_b": llm_b,
        "conv_mat": conv_mat, "conv_bias": conv_bias,
        "fc_w": fc_w, "fc_b": fc_b,
        "ent_bias": ent_bias,
    }


# ---------------------------------- forward wrapper --------------------------------------------
@functools.partial(jax.jit, static_argnames=("mode",))
def disenkgat_conve_forward(folded, sub, rel, text_ids=None, text_mask=None, mode="test"):
    del text_ids, text_mask   # only consumed by the (surrogate) frozen PLM
    del mode                  # test path (corr = 0.0)
    B = sub.shape[0]
    n_tiles = -(-B // B_TILE)
    b_pad = n_tiles * B_TILE
    pad = b_pad - B
    sub_pad = jnp.concatenate([sub.astype(jnp.int32), jnp.zeros((pad,), jnp.int32)])
    rel_pad = jnp.concatenate([rel.astype(jnp.int32), jnp.zeros((pad,), jnp.int32)])

    def const(shape):
        zeros = (0,) * len(shape)
        return pl.BlockSpec(shape, lambda g, s_ref, r_ref, _z=zeros: _z)

    grid_spec = pltpu.PrefetchScalarGridSpec(
        num_scalar_prefetch=2,                       # sub / rel indices -> SMEM
        grid=(n_tiles,),
        in_specs=[
            const((NUM_ENT, EMBED_DIM)),             # init_embed (row-gather source)
            const((2 * NUM_REL, EMBED_DIM)),         # init_rel
            const((EMBED_DIM, N_PAD)),               # init_embed^T, entity-padded (lane dense)
            const((EMBED_DIM, KD)),                  # pca_w
            const((KD, EMBED_DIM)),                  # pca_w^T
            const((1, KD)),                          # pca_b (row)
            const((KD, 1)),                          # pca_b (col)
            const((EMBED_DIM, PROMPT_HID)),          # prompter_w1 (bias=False)
            const((PROMPT_HID, LPM)),                # prompter_w2 (bias=False)
            const((PM, EMBED_DIM)),                  # llm_fc_w  ([even|odd] columns)
            const((1, EMBED_DIM)),                   # llm_fc_b  ([even|odd] columns)
            const((IMG_SZ, FLAT_SZ)),                # im2col conv matrix (bn0/bn1 folded)
            const((1, FLAT_SZ)),                     # conv bias row
            const((FLAT_SZ, EMBED_DIM)),             # fc_w (bn2 folded)
            const((1, EMBED_DIM)),                   # fc_b (bn2 folded)
            const((1, N_PAD)),                       # entity bias (padded)
        ],
        out_specs=pl.BlockSpec((B_TILE, N_PAD), lambda g, s_ref, r_ref: (g, 0)),
        scratch_shapes=[pltpu.VMEM((B_TILE, EMBED_DIM), jnp.float32),   # gathered sub rows
                        pltpu.VMEM((B_TILE, EMBED_DIM), jnp.float32)],  # gathered rel rows
    )

    out = pl.pallas_call(
        functools.partial(_fused_forward_kernel, slot_map=_surrogate_slot_map()),
        out_shape=jax.ShapeDtypeStruct((b_pad, N_PAD), jnp.float32),
        grid_spec=grid_spec,
        compiler_params=pltpu.CompilerParams(
            dimension_semantics=("parallel",)),      # batch tiles shard across v7x's 2 TCs
    )(sub_pad, rel_pad,
      folded["init_embed"], folded["init_rel"], folded["init_embed_t"],
      folded["pca_w"], folded["pca_w_t"], folded["pca_b_row"], folded["pca_b_col"],
      folded["prompter_w1"], folded["prompter_w2"], folded["llm_w"], folded["llm_b"],
      folded["conv_mat"], folded["conv_bias"], folded["fc_w"], folded["fc_b"],
      folded["ent_bias"])

    return out[:B, :NUM_ENT], jnp.float32(0.0)       # corr = 0.0 on the test path


# ------------------------------ parameters ------------------------------------
def init_params(key):
    keys = jax.random.split(key, 24)

    def u(k, shape, scale=0.2):
        return jax.random.uniform(k, shape, jnp.float32, -scale, scale)

    D, K = EMBED_DIM, NUM_FACTORS
    return {
        "init_embed": u(keys[0], (NUM_ENT, D), 1.0),
        "init_rel": u(keys[1], (2 * NUM_REL, D), 1.0),
        # all linear weights stored pre-transposed as (in, out)
        "pca_w": u(keys[2], (D, K * D)),
        "pca_b": u(keys[3], (1, K * D)),
        "prompter_w1": u(keys[4], (D, PROMPT_HID)),                               # bias=False
        "prompter_w2": u(keys[5], (PROMPT_HID, MODEL_DIM * NUM_LAYERS * PROMPT_LEN)),
        "llm_fc_w": u(keys[6], (PROMPT_LEN * MODEL_DIM, D)),
        "llm_fc_b": u(keys[7], (1, D)),
        "conv_w": u(keys[8], (NUM_FILT, KER_SZ, KER_SZ), 0.5),                    # p.bias=False
        "fc_w": u(keys[9], (FLAT_SZ, D)),
        "fc_b": u(keys[10], (1, D)),
        "ent_bias": u(keys[11], (1, NUM_ENT)),
        # BatchNorm (eval mode): gamma / beta / running_mean / running_var
        "bn0_g": 1.0 + u(keys[12], ()),
        "bn0_b": u(keys[13], ()),
        "bn0_m": u(keys[14], ()),
        "bn0_v": 1.0 + u(keys[15], (), 0.1),
        "bn1_g": 1.0 + u(keys[16], (NUM_FILT,)),
        "bn1_b": u(keys[17], (NUM_FILT,)),
        "bn1_m": u(keys[18], (NUM_FILT,)),
        "bn1_v": 1.0 + u(keys[19], (NUM_FILT,), 0.1),
        "bn2_g": 1.0 + u(keys[20], (EMBED_DIM,)),
        "bn2_b": u(keys[21], (EMBED_DIM,)),
        "bn2_m": u(keys[22], (EMBED_DIM,)),
        "bn2_v": 1.0 + u(keys[23], (EMBED_DIM,), 0.1),
    }


if __name__ == "__main__":
    key = jax.random.PRNGKey(0)
    params = init_params(key)
    folded = fold_params(params)           # one-time, outside the per-call jit path

    sub = jnp.array([0, 3, 7, 11, 2, 39, 5, 8, 21, 13, 30, 17], dtype=jnp.int32)   # < NUM_ENT
    rel = jnp.array([1, 4, 2, 9, 0, 7, 3, 5, 6, 8, 2, 1], dtype=jnp.int32)         # < 2*NUM_REL
    text_ids = jnp.zeros((BATCH, 8), jnp.int32)     # unused (surrogate PLM)
    text_mask = jnp.ones((BATCH, 8), jnp.int32)     # unused (surrogate PLM)

    logist, corr = disenkgat_conve_forward(folded, sub, rel, text_ids, text_mask, mode="test")
    logist = jax.block_until_ready(logist)
    assert logist.shape == (BATCH, NUM_ENT)
    assert bool(jnp.all(jnp.isfinite(logist)))
    print("KERNEL_OK")
</pallas_src>

<mosaic_0001>
module attributes {stable_mosaic.version = 11 : i64} {
  func.func @_fused_forward_kernel(%arg0: i32, %arg1: memref<16xi32, #tpu.memory_space<smem>>, %arg2: memref<16xi32, #tpu.memory_space<smem>>, %arg3: memref<40x32xf32, #tpu.memory_space<vmem>>, %arg4: memref<10x32xf32, #tpu.memory_space<vmem>>, %arg5: memref<32x128xf32, #tpu.memory_space<vmem>>, %arg6: memref<32x96xf32, #tpu.memory_space<vmem>>, %arg7: memref<96x32xf32, #tpu.memory_space<vmem>>, %arg8: memref<1x96xf32, #tpu.memory_space<vmem>>, %arg9: memref<96x1xf32, #tpu.memory_space<vmem>>, %arg10: memref<32x24xf32, #tpu.memory_space<vmem>>, %arg11: memref<24x64xf32, #tpu.memory_space<vmem>>, %arg12: memref<32x32xf32, #tpu.memory_space<vmem>>, %arg13: memref<1x32xf32, #tpu.memory_space<vmem>>, %arg14: memref<64x112xf32, #tpu.memory_space<vmem>>, %arg15: memref<1x112xf32, #tpu.memory_space<vmem>>, %arg16: memref<112x32xf32, #tpu.memory_space<vmem>>, %arg17: memref<1x32xf32, #tpu.memory_space<vmem>>, %arg18: memref<1x128xf32, #tpu.memory_space<vmem>>, %arg19: memref<8x128xf32, #tpu.memory_space<vmem>>, %arg20: memref<8x32xf32, #tpu.memory_space<vmem>>, %arg21: memref<8x32xf32, #tpu.memory_space<vmem>>) attributes {dimension_semantics = [#tpu.dimension_semantics<parallel>], iteration_bounds = array<i64: 2>, scalar_prefetch = 2 : i64, scratch_operands = 2 : i64, tpu.core_type = #tpu.core_type<tc>, window_params = [{pipeline_mode = #tpu.pipeline_mode<synchronous>, transform_indices = @transform_0, window_bounds = array<i64: 40, 32>}, {pipeline_mode = #tpu.pipeline_mode<synchronous>, transform_indices = @transform_1, window_bounds = array<i64: 10, 32>}, {pipeline_mode = #tpu.pipeline_mode<synchronous>, transform_indices = @transform_2, window_bounds = array<i64: 32, 128>}, {pipeline_mode = #tpu.pipeline_mode<synchronous>, transform_indices = @transform_3, window_bounds = array<i64: 32, 96>}, {pipeline_mode = #tpu.pipeline_mode<synchronous>, transform_indices = @transform_4, window_bounds = array<i64: 96, 32>}, {pipeline_mode = #tpu.pipeline_mode<synchronous>, transform_indices = @transform_5, window_bounds = array<i64: 1, 96>}, {pipeline_mode = #tpu.pipeline_mode<synchronous>, transform_indices = @transform_6, window_bounds = array<i64: 96, 1>}, {pipeline_mode = #tpu.pipeline_mode<synchronous>, transform_indices = @transform_7, window_bounds = array<i64: 32, 24>}, {pipeline_mode = #tpu.pipeline_mode<synchronous>, transform_indices = @transform_8, window_bounds = array<i64: 24, 64>}, {pipeline_mode = #tpu.pipeline_mode<synchronous>, transform_indices = @transform_9, window_bounds = array<i64: 32, 32>}, {pipeline_mode = #tpu.pipeline_mode<synchronous>, transform_indices = @transform_10, window_bounds = array<i64: 1, 32>}, {pipeline_mode = #tpu.pipeline_mode<synchronous>, transform_indices = @transform_11, window_bounds = array<i64: 64, 112>}, {pipeline_mode = #tpu.pipeline_mode<synchronous>, transform_indices = @transform_12, window_bounds = array<i64: 1, 112>}, {pipeline_mode = #tpu.pipeline_mode<synchronous>, transform_indices = @transform_13, window_bounds = array<i64: 112, 32>}, {pipeline_mode = #tpu.pipeline_mode<synchronous>, transform_indices = @transform_14, window_bounds = array<i64: 1, 32>}, {pipeline_mode = #tpu.pipeline_mode<synchronous>, transform_indices = @transform_15, window_bounds = array<i64: 1, 128>}, {transform_indices = @transform_16, window_bounds = array<i64: 8, 128>}]} {
    %c8_i32 = arith.constant 8 : i32
    %0 = arith.muli %arg0, %c8_i32 : i32
    %c0_i32 = arith.constant 0 : i32
    %1 = arith.addi %0, %c0_i32 : i32
    %2 = arith.index_cast %1 : i32 to index
    %3 = memref.load %arg1[%2] : memref<16xi32, #tpu.memory_space<smem>>
    %c8_i32_0 = arith.constant 8 : i32
    %4 = arith.muli %arg0, %c8_i32_0 : i32
    %c0_i32_1 = arith.constant 0 : i32
    %5 = arith.addi %4, %c0_i32_1 : i32
    %6 = arith.index_cast %5 : i32 to index
    %7 = memref.load %arg2[%6] : memref<16xi32, #tpu.memory_space<smem>>
    %8 = arith.index_cast %3 : i32 to index
    %c0 = arith.constant 0 : index
    %9 = vector.load %arg3[%8, %c0] : memref<40x32xf32, #tpu.memory_space<vmem>>, vector<1x32xf32>
    %c0_2 = arith.constant 0 : index
    %c0_3 = arith.constant 0 : index
    %10 = vector.load %arg20[%c0_2, %c0_3] : memref<8x32xf32, #tpu.memory_space<vmem>>, vector<1x32xf32>
    tpu.vector_store %arg20[%c0_2, %c0_3], %9 {strides = array<i32>} : memref<8x32xf32, #tpu.memory_space<vmem>>, vector<1x32xf32>,
    %11 = arith.index_cast %7 : i32 to index
    %c0_4 = arith.constant 0 : index
    %12 = vector.load %arg4[%11, %c0_4] : memref<10x32xf32, #tpu.memory_space<vmem>>, vector<1x32xf32>
    %c0_5 = arith.constant 0 : index
    %c0_6 = arith.constant 0 : index
    %13 = vector.load %arg21[%c0_5, %c0_6] : memref<8x32xf32, #tpu.memory_space<vmem>>, vector<1x32xf32>
    tpu.vector_store %arg21[%c0_5, %c0_6], %12 {strides = array<i32>} : memref<8x32xf32, #tpu.memory_space<vmem>>, vector<1x32xf32>,
    %c8_i32_7 = arith.constant 8 : i32
    %14 = arith.muli %arg0, %c8_i32_7 : i32
    %c1_i32 = arith.constant 1 : i32
    %15 = arith.addi %14, %c1_i32 : i32
    %16 = arith.index_cast %15 : i32 to index
    %17 = memref.load %arg1[%16] : memref<16xi32, #tpu.memory_space<smem>>
    %c8_i32_8 = arith.constant 8 : i32
    %18 = arith.muli %arg0, %c8_i32_8 : i32
    %c1_i32_9 = arith.constant 1 : i32
    %19 = arith.addi %18, %c1_i32_9 : i32
    %20 = arith.index_cast %19 : i32 to index
    %21 = memref.load %arg2[%20] : memref<16xi32, #tpu.memory_space<smem>>
    %22 = arith.index_cast %17 : i32 to index
    %c0_10 = arith.constant 0 : index
    %23 = vector.load %arg3[%22, %c0_10] : memref<40x32xf32, #tpu.memory_space<vmem>>, vector<1x32xf32>
    %c1 = arith.constant 1 : index
    %c0_11 = arith.constant 0 : index
    %24 = vector.load %arg20[%c1, %c0_11] : memref<8x32xf32, #tpu.memory_space<vmem>>, vector<1x32xf32>
    tpu.vector_store %arg20[%c1, %c0_11], %23 {strides = array<i32>} : memref<8x32xf32, #tpu.memory_space<vmem>>, vector<1x32xf32>,
    %25 = arith.index_cast %21 : i32 to index
    %c0_12 = arith.constant 0 : index
    %26 = vector.load %arg4[%25, %c0_12] : memref<10x32xf32, #tpu.memory_space<vmem>>, vector<1x32xf32>
    %c1_13 = arith.constant 1 : index
    %c0_14 = arith.constant 0 : index
    %27 = vector.load %arg21[%c1_13, %c0_14] : memref<8x32xf32, #tpu.memory_space<vmem>>, vector<1x32xf32>
    tpu.vector_store %arg21[%c1_13, %c0_14], %26 {strides = array<i32>} : memref<8x32xf32, #tpu.memory_space<vmem>>, vector<1x32xf32>,
    %c8_i32_15 = arith.constant 8 : i32
    %28 = arith.muli %arg0, %c8_i32_15 : i32
    %c2_i32 = arith.constant 2 : i32
    %29 = arith.addi %28, %c2_i32 : i32
    %30 = arith.index_cast %29 : i32 to index
    %31 = memref.load %arg1[%30] : memref<16xi32, #tpu.memory_space<smem>>
    %c8_i32_16 = arith.constant 8 : i32
    %32 = arith.muli %arg0, %c8_i32_16 : i32
    %c2_i32_17 = arith.constant 2 : i32
    %33 = arith.addi %32, %c2_i32_17 : i32
    %34 = arith.index_cast %33 : i32 to index
    %35 = memref.load %arg2[%34] : memref<16xi32, #tpu.memory_space<smem>>
    %36 = arith.index_cast %31 : i32 to index
    %c0_18 = arith.constant 0 : index
    %37 = vector.load %arg3[%36, %c0_18] : memref<40x32xf32, #tpu.memory_space<vmem>>, vector<1x32xf32>
    %c2 = arith.constant 2 : index
    %c0_19 = arith.constant 0 : index
    %38 = vector.load %arg20[%c2, %c0_19] : memref<8x32xf32, #tpu.memory_space<vmem>>, vector<1x32xf32>
    tpu.vector_store %arg20[%c2, %c0_19], %37 {strides = array<i32>} : memref<8x32xf32, #tpu.memory_space<vmem>>, vector<1x32xf32>,
    %39 = arith.index_cast %35 : i32 to index
    %c0_20 = arith.constant 0 : index
    %40 = vector.load %arg4[%39, %c0_20] : memref<10x32xf32, #tpu.memory_space<vmem>>, vector<1x32xf32>
    %c2_21 = arith.constant 2 : index
    %c0_22 = arith.constant 0 : index
    %41 = vector.load %arg21[%c2_21, %c0_22] : memref<8x32xf32, #tpu.memory_space<vmem>>, vector<1x32xf32>
    tpu.vector_store %arg21[%c2_21, %c0_22], %40 {strides = array<i32>} : memref<8x32xf32, #tpu.memory_space<vmem>>, vector<1x32xf32>,
    %c8_i32_23 = arith.constant 8 : i32
    %42 = arith.muli %arg0, %c8_i32_23 : i32
    %c3_i32 = arith.constant 3 : i32
    %43 = arith.addi %42, %c3_i32 : i32
    %44 = arith.index_cast %43 : i32 to index
    %45 = memref.load %arg1[%44] : memref<16xi32, #tpu.memory_space<smem>>
    %c8_i32_24 = arith.constant 8 : i32
    %46 = arith.muli %arg0, %c8_i32_24 : i32
    %c3_i32_25 = arith.constant 3 : i32
    %47 = arith.addi %46, %c3_i32_25 : i32
    %48 = arith.index_cast %47 : i32 to index
    %49 = memref.load %arg2[%48] : memref<16xi32, #tpu.memory_space<smem>>
    %50 = arith.index_cast %45 : i32 to index
    %c0_26 = arith.constant 0 : index
    %51 = vector.load %arg3[%50, %c0_26] : memref<40x32xf32, #tpu.memory_space<vmem>>, vector<1x32xf32>
    %c3 = arith.constant 3 : index
    %c0_27 = arith.constant 0 : index
    %52 = vector.load %arg20[%c3, %c0_27] : memref<8x32xf32, #tpu.memory_space<vmem>>, vector<1x32xf32>
    tpu.vector_store %arg20[%c3, %c0_27], %51 {strides = array<i32>} : memref<8x32xf32, #tpu.memory_space<vmem>>, vector<1x32xf32>,
    %53 = arith.index_cast %49 : i32 to index
    %c0_28 = arith.constant 0 : index
    %54 = vector.load %arg4[%53, %c0_28] : memref<10x32xf32, #tpu.memory_space<vmem>>, vector<1x32xf32>
    %c3_29 = arith.constant 3 : index
    %c0_30 = arith.constant 0 : index
    %55 = vector.load %arg21[%c3_29, %c0_30] : memref<8x32xf32, #tpu.memory_space<vmem>>, vector<1x32xf32>
    tpu.vector_store %arg21[%c3_29, %c0_30], %54 {strides = array<i32>} : memref<8x32xf32, #tpu.memory_space<vmem>>, vector<1x32xf32>,
    %c8_i32_31 = arith.constant 8 : i32
    %56 = arith.muli %arg0, %c8_i32_31 : i32
    %c4_i32 = arith.constant 4 : i32
    %57 = arith.addi %56, %c4_i32 : i32
    %58 = arith.index_cast %57 : i32 to index
    %59 = memref.load %arg1[%58] : memref<16xi32, #tpu.memory_space<smem>>
    %c8_i32_32 = arith.constant 8 : i32
    %60 = arith.muli %arg0, %c8_i32_32 : i32
    %c4_i32_33 = arith.constant 4 : i32
    %61 = arith.addi %60, %c4_i32_33 : i32
    %62 = arith.index_cast %61 : i32 to index
    %63 = memref.load %arg2[%62] : memref<16xi32, #tpu.memory_space<smem>>
    %64 = arith.index_cast %59 : i32 to index
    %c0_34 = arith.constant 0 : index
    %65 = vector.load %arg3[%64, %c0_34] : memref<40x32xf32, #tpu.memory_space<vmem>>, vector<1x32xf32>
    %c4 = arith.constant 4 : index
    %c0_35 = arith.constant 0 : index
    %66 = vector.load %arg20[%c4, %c0_35] : memref<8x32xf32, #tpu.memory_space<vmem>>, vector<1x32xf32>
    tpu.vector_store %arg20[%c4, %c0_35], %65 {strides = array<i32>} : memref<8x32xf32, #tpu.memory_space<vmem>>, vector<1x32xf32>,
    %67 = arith.index_cast %63 : i32 to index
    %c0_36 = arith.constant 0 : index
    %68 = vector.load %arg4[%67, %c0_36] : memref<10x32xf32, #tpu.memory_space<vmem>>, vector<1x32xf32>
    %c4_37 = arith.constant 4 : index
    %c0_38 = arith.constant 0 : index
    %69 = vector.load %arg21[%c4_37, %c0_38] : memref<8x32xf32, #tpu.memory_space<vmem>>, vector<1x32xf32>
    tpu.vector_store %arg21[%c4_37, %c0_38], %68 {strides = array<i32>} : memref<8x32xf32, #tpu.memory_space<vmem>>, vector<1x32xf32>,
    %c8_i32_39 = arith.constant 8 : i32
    %70 = arith.muli %arg0, %c8_i32_39 : i32
    %c5_i32 = arith.constant 5 : i32
    %71 = arith.addi %70, %c5_i32 : i32
    %72 = arith.index_cast %71 : i32 to index
    %73 = memref.load %arg1[%72] : memref<16xi32, #tpu.memory_space<smem>>
    %c8_i32_40 = arith.constant 8 : i32
    %74 = arith.muli %arg0, %c8_i32_40 : i32
    %c5_i32_41 = arith.constant 5 : i32
    %75 = arith.addi %74, %c5_i32_41 : i32
    %76 = arith.index_cast %75 : i32 to index
    %77 = memref.load %arg2[%76] : memref<16xi32, #tpu.memory_space<smem>>
    %78 = arith.index_cast %73 : i32 to index
    %c0_42 = arith.constant 0 : index
    %79 = vector.load %arg3[%78, %c0_42] : memref<40x32xf32, #tpu.memory_space<vmem>>, vector<1x32xf32>
    %c5 = arith.constant 5 : index
    %c0_43 = arith.constant 0 : index
    %80 = vector.load %arg20[%c5, %c0_43] : memref<8x32xf32, #tpu.memory_space<vmem>>, vector<1x32xf32>
    tpu.vector_store %arg20[%c5, %c0_43], %79 {strides = array<i32>} : memref<8x32xf32, #tpu.memory_space<vmem>>, vector<1x32xf32>,
    %81 = arith.index_cast %77 : i32 to index
    %c0_44 = arith.constant 0 : index
    %82 = vector.load %arg4[%81, %c0_44] : memref<10x32xf32, #tpu.memory_space<vmem>>, vector<1x32xf32>
    %c5_45 = arith.constant 5 : index
    %c0_46 = arith.constant 0 : index
    %83 = vector.load %arg21[%c5_45, %c0_46] : memref<8x32xf32, #tpu.memory_space<vmem>>, vector<1x32xf32>
    tpu.vector_store %arg21[%c5_45, %c0_46], %82 {strides = array<i32>} : memref<8x32xf32, #tpu.memory_space<vmem>>, vector<1x32xf32>,
    %c8_i32_47 = arith.constant 8 : i32
    %84 = arith.muli %arg0, %c8_i32_47 : i32
    %c6_i32 = arith.constant 6 : i32
    %85 = arith.addi %84, %c6_i32 : i32
    %86 = arith.index_cast %85 : i32 to index
    %87 = memref.load %arg1[%86] : memref<16xi32, #tpu.memory_space<smem>>
    %c8_i32_48 = arith.constant 8 : i32
    %88 = arith.muli %arg0, %c8_i32_48 : i32
    %c6_i32_49 = arith.constant 6 : i32
    %89 = arith.addi %88, %c6_i32_49 : i32
    %90 = arith.index_cast %89 : i32 to index
    %91 = memref.load %arg2[%90] : memref<16xi32, #tpu.memory_space<smem>>
    %92 = arith.index_cast %87 : i32 to index
    %c0_50 = arith.constant 0 : index
    %93 = vector.load %arg3[%92, %c0_50] : memref<40x32xf32, #tpu.memory_space<vmem>>, vector<1x32xf32>
    %c6 = arith.constant 6 : index
    %c0_51 = arith.constant 0 : index
    %94 = vector.load %arg20[%c6, %c0_51] : memref<8x32xf32, #tpu.memory_space<vmem>>, vector<1x32xf32>
    tpu.vector_store %arg20[%c6, %c0_51], %93 {strides = array<i32>} : memref<8x32xf32, #tpu.memory_space<vmem>>, vector<1x32xf32>,
    %95 = arith.index_cast %91 : i32 to index
    %c0_52 = arith.constant 0 : index
    %96 = vector.load %arg4[%95, %c0_52] : memref<10x32xf32, #tpu.memory_space<vmem>>, vector<1x32xf32>
    %c6_53 = arith.constant 6 : index
    %c0_54 = arith.constant 0 : index
    %97 = vector.load %arg21[%c6_53, %c0_54] : memref<8x32xf32, #tpu.memory_space<vmem>>, vector<1x32xf32>
    tpu.vector_store %arg21[%c6_53, %c0_54], %96 {strides = array<i32>} : memref<8x32xf32, #tpu.memory_space<vmem>>, vector<1x32xf32>,
    %c8_i32_55 = arith.constant 8 : i32
    %98 = arith.muli %arg0, %c8_i32_55 : i32
    %c7_i32 = arith.constant 7 : i32
    %99 = arith.addi %98, %c7_i32 : i32
    %100 = arith.index_cast %99 : i32 to index
    %101 = memref.load %arg1[%100] : memref<16xi32, #tpu.memory_space<smem>>
    %c8_i32_56 = arith.constant 8 : i32
    %102 = arith.muli %arg0, %c8_i32_56 : i32
    %c7_i32_57 = arith.constant 7 : i32
    %103 = arith.addi %102, %c7_i32_57 : i32
    %104 = arith.index_cast %103 : i32 to index
    %105 = memref.load %arg2[%104] : memref<16xi32, #tpu.memory_space<smem>>
    %106 = arith.index_cast %101 : i32 to index
    %c0_58 = arith.constant 0 : index
    %107 = vector.load %arg3[%106, %c0_58] : memref<40x32xf32, #tpu.memory_space<vmem>>, vector<1x32xf32>
    %c7 = arith.constant 7 : index
    %c0_59 = arith.constant 0 : index
    %108 = vector.load %arg20[%c7, %c0_59] : memref<8x32xf32, #tpu.memory_space<vmem>>, vector<1x32xf32>
    tpu.vector_store %arg20[%c7, %c0_59], %107 {strides = array<i32>} : memref<8x32xf32, #tpu.memory_space<vmem>>, vector<1x32xf32>,
    %109 = arith.index_cast %105 : i32 to index
    %c0_60 = arith.constant 0 : index
    %110 = vector.load %arg4[%109, %c0_60] : memref<10x32xf32, #tpu.memory_space<vmem>>, vector<1x32xf32>
    %c7_61 = arith.constant 7 : index
    %c0_62 = arith.constant 0 : index
    %111 = vector.load %arg21[%c7_61, %c0_62] : memref<8x32xf32, #tpu.memory_space<vmem>>, vector<1x32xf32>
    tpu.vector_store %arg21[%c7_61, %c0_62], %110 {strides = array<i32>} : memref<8x32xf32, #tpu.memory_space<vmem>>, vector<1x32xf32>,
    %c0_63 = arith.constant 0 : index
    %c0_64 = arith.constant 0 : index
    %112 = vector.load %arg20[%c0_63, %c0_64] : memref<8x32xf32, #tpu.memory_space<vmem>>, vector<8x32xf32>
    %c0_65 = arith.constant 0 : index
    %c0_66 = arith.constant 0 : index
    %113 = vector.load %arg21[%c0_65, %c0_66] : memref<8x32xf32, #tpu.memory_space<vmem>>, vector<8x32xf32>
    %c0_67 = arith.constant 0 : index
    %c0_68 = arith.constant 0 : index
    %114 = vector.load %arg7[%c0_67, %c0_68] : memref<96x32xf32, #tpu.memory_space<vmem>>, vector<96x32xf32>
    %c0_69 = arith.constant 0 : index
    %c0_70 = arith.constant 0 : index
    %115 = vector.load %arg5[%c0_69, %c0_70] : memref<32x128xf32, #tpu.memory_space<vmem>>, vector<32x128xf32>
    %cst = arith.constant dense<0.000000e+00> : vector<96x128xf32>
    %116 = tpu.matmul %114, %115, %cst {dimension_numbers = #tpu.dot_dimension_numbers<[1], [0], [0], [1], [0, 0, 1, 1], [], []>} : vector<96x32xf32>, vector<32x128xf32>, vector<96x128xf32> -> vector<96x128xf32>
    %c0_71 = arith.constant 0 : index
    %c0_72 = arith.constant 0 : index
    %117 = vector.load %arg9[%c0_71, %c0_72] : memref<96x1xf32, #tpu.memory_space<vmem>>, vector<96x1xf32>
    %118 = vector.broadcast %117 : vector<96x1xf32> to vector<96x128xf32>
    %119 = arith.addf %116, %118 : vector<96x128xf32>
    %120 = math.tanh %119 : vector<96x128xf32>
    %c0_73 = arith.constant 0 : index
    %c0_74 = arith.constant 0 : index
    %121 = vector.load %arg6[%c0_73, %c0_74] : memref<32x96xf32, #tpu.memory_space<vmem>>, vector<32x96xf32>
    %cst_75 = arith.constant dense<0.000000e+00> : vector<8x96xf32>
    %122 = tpu.matmul %112, %121, %cst_75 {dimension_numbers = #tpu.dot_dimension_numbers<[1], [0], [0], [1], [0, 0, 1, 1], [], []>} : vector<8x32xf32>, vector<32x96xf32>, vector<8x96xf32> -> vector<8x96xf32>
    %c0_76 = arith.constant 0 : index
    %c0_77 = arith.constant 0 : index
    %123 = vector.load %arg8[%c0_76, %c0_77] : memref<1x96xf32, #tpu.memory_space<vmem>>, vector<1x96xf32>
    %124 = vector.broadcast %123 : vector<1x96xf32> to vector<8x96xf32>
    %125 = arith.addf %122, %124 : vector<8x96xf32>
    %126 = math.tanh %125 : vector<8x96xf32>
    %127 = vector.extract_strided_slice %126 {offsets = [0, 64], sizes = [8, 32], strides = [1, 1]} : vector<8x96xf32> to vector<8x32xf32>
    %128 = tpu.concatenate %127, %113 in 0 : vector<8x32xf32>, vector<8x32xf32> -> vector<16x32xf32>
    %c0_78 = arith.constant 0 : index
    %c0_79 = arith.constant 0 : index
    %129 = vector.load %arg10[%c0_78, %c0_79] : memref<32x24xf32, #tpu.memory_space<vmem>>, vector<32x24xf32>
    %cst_80 = arith.constant dense<0.000000e+00> : vector<16x24xf32>
    %130 = tpu.matmul %128, %129, %cst_80 {dimension_numbers = #tpu.dot_dimension_numbers<[1], [0], [0], [1], [0, 0, 1, 1], [], []>} : vector<16x32xf32>, vector<32x24xf32>, vector<16x24xf32> -> vector<16x24xf32>
    %cst_81 = arith.constant 0.000000e+00 : f32
    %131 = vector.broadcast %cst_81 : f32 to vector<16x24xf32>
    %132 = arith.maximumf %130, %131 : vector<16x24xf32>
    %c0_82 = arith.constant 0 : index
    %c0_83 = arith.constant 0 : index
    %133 = vector.load %arg11[%c0_82, %c0_83] : memref<24x64xf32, #tpu.memory_space<vmem>>, vector<24x64xf32>
    %cst_84 = arith.constant dense<0.000000e+00> : vector<16x64xf32>
    %134 = tpu.matmul %132, %133, %cst_84 {dimension_numbers = #tpu.dot_dimension_numbers<[1], [0], [0], [1], [0, 0, 1, 1], [], []>} : vector<16x24xf32>, vector<24x64xf32>, vector<16x64xf32> -> vector<16x64xf32>
    %135 = vector.extract_strided_slice %134 {offsets = [0, 0], sizes = [8, 32], strides = [1, 1]} : vector<16x64xf32> to vector<8x32xf32>
    %136 = vector.extract_strided_slice %134 {offsets = [0, 32], sizes = [8, 32], strides = [1, 1]} : vector<16x64xf32> to vector<8x32xf32>
    %137 = vector.extract_strided_slice %134 {offsets = [8, 0], sizes = [8, 32], strides = [1, 1]} : vector<16x64xf32> to vector<8x32xf32>
    %138 = vector.extract_strided_slice %134 {offsets = [8, 32], sizes = [8, 32], strides = [1, 1]} : vector<16x64xf32> to vector<8x32xf32>
    %139 = tpu.concatenate %135, %136, %137, %138 in 0 : vector<8x32xf32>, vector<8x32xf32>, vector<8x32xf32>, vector<8x32xf32> -> vector<32x32xf32>
    %c0_85 = arith.constant 0 : index
    %c0_86 = arith.constant 0 : index
    %140 = vector.load %arg12[%c0_85, %c0_86] : memref<32x32xf32, #tpu.memory_space<vmem>>, vector<32x32xf32>
    %cst_87 = arith.constant dense<0.000000e+00> : vector<32x32xf32>
    %141 = tpu.matmul %139, %140, %cst_87 {dimension_numbers = #tpu.dot_dimension_numbers<[1], [0], [0], [1], [0, 0, 1, 1], [], []>} : vector<32x32xf32>, vector<32x32xf32>, vector<32x32xf32> -> vector<32x32xf32>
    %c0_88 = arith.constant 0 : index
    %c0_89 = arith.constant 0 : index
    %142 = vector.load %arg13[%c0_88, %c0_89] : memref<1x32xf32, #tpu.memory_space<vmem>>, vector<1x32xf32>
    %143 = vector.broadcast %142 : vector<1x32xf32> to vector<32x32xf32>
    %144 = arith.addf %141, %143 : vector<32x32xf32>
    %145 = vector.extract_strided_slice %144 {offsets = [24, 0], sizes = [8, 32], strides = [1, 1]} : vector<32x32xf32> to vector<8x32xf32>
    %146 = vector.extract_strided_slice %144 {offsets = [0, 0], sizes = [8, 32], strides = [1, 1]} : vector<32x32xf32> to vector<8x32xf32>
    %147 = arith.mulf %146, %145 : vector<8x32xf32>
    %cst_90 = arith.constant dense<0.000000e+00> : vector<8xf32>
    %148 = vector.multi_reduction <add>, %147, %cst_90 [1] : vector<8x32xf32> to vector<8xf32>
    %149 = vector.shape_cast %148 : vector<8xf32> to vector<8x1xf32>
    %cst_91 = arith.constant 2.000000e-01 : f32
    %150 = vector.broadcast %cst_91 : f32 to vector<8x1xf32>
    %151 = arith.mulf %150, %149 : vector<8x1xf32>
    %152 = arith.maximumf %149, %151 : vector<8x1xf32>
    %153 = vector.extract_strided_slice %144 {offsets = [8, 0], sizes = [8, 32], strides = [1, 1]} : vector<32x32xf32> to vector<8x32xf32>
    %154 = arith.mulf %153, %145 : vector<8x32xf32>
    %cst_92 = arith.constant dense<0.000000e+00> : vector<8xf32>
    %155 = vector.multi_reduction <add>, %154, %cst_92 [1] : vector<8x32xf32> to vector<8xf32>
    %156 = vector.shape_cast %155 : vector<8xf32> to vector<8x1xf32>
    %cst_93 = arith.constant 2.000000e-01 : f32
    %157 = vector.broadcast %cst_93 : f32 to vector<8x1xf32>
    %158 = arith.mulf %157, %156 : vector<8x1xf32>
    %159 = arith.maximumf %156, %158 : vector<8x1xf32>
    %160 = vector.extract_strided_slice %144 {offsets = [16, 0], sizes = [8, 32], strides = [1, 1]} : vector<32x32xf32> to vector<8x32xf32>
    %161 = arith.mulf %160, %145 : vector<8x32xf32>
    %cst_94 = arith.constant dense<0.000000e+00> : vector<8xf32>
    %162 = vector.multi_reduction <add>, %161, %cst_94 [1] : vector<8x32xf32> to vector<8xf32>
    %163 = vector.shape_cast %162 : vector<8xf32> to vector<8x1xf32>
    %cst_95 = arith.constant 2.000000e-01 : f32
    %164 = vector.broadcast %cst_95 : f32 to vector<8x1xf32>
    %165 = arith.mulf %164, %163 : vector<8x1xf32>
    %166 = arith.maximumf %163, %165 : vector<8x1xf32>
    %167 = arith.maximumf %152, %159 : vector<8x1xf32>
    %168 = arith.maximumf %167, %166 : vector<8x1xf32>
    %169 = arith.subf %152, %168 : vector<8x1xf32>
    %170 = math.exp %169 : vector<8x1xf32>
    %171 = arith.subf %159, %168 : vector<8x1xf32>
    %172 = math.exp %171 : vector<8x1xf32>
    %173 = arith.subf %166, %168 : vector<8x1xf32>
    %174 = math.exp %173 : vector<8x1xf32>
    %175 = arith.addf %170, %172 : vector<8x1xf32>
    %176 = arith.addf %175, %174 : vector<8x1xf32>
    %cst_96 = arith.constant 1.000000e+00 : f32
    %177 = vector.broadcast %cst_96 : f32 to vector<8x1xf32>
    %178 = arith.divf %177, %176 : vector<8x1xf32>
    %179 = vector.extract_strided_slice %144 {offsets = [0, 0], sizes = [24, 32], strides = [1, 1]} : vector<32x32xf32> to vector<24x32xf32>
    %180 = tpu.concatenate %145, %145, %145 in 0 : vector<8x32xf32>, vector<8x32xf32>, vector<8x32xf32> -> vector<24x32xf32>
    %181 = tpu.concatenate %179, %180 in 1 : vector<24x32xf32>, vector<24x32xf32> -> vector<24x64xf32>
    %c0_97 = arith.constant 0 : index
    %c0_98 = arith.constant 0 : index
    %182 = vector.load %arg14[%c0_97, %c0_98] : memref<64x112xf32, #tpu.memory_space<vmem>>, vector<64x112xf32>
    %cst_99 = arith.constant dense<0.000000e+00> : vector<24x112xf32>
    %183 = tpu.matmul %181, %182, %cst_99 {dimension_numbers = #tpu.dot_dimension_numbers<[1], [0], [0], [1], [0, 0, 1, 1], [], []>} : vector<24x64xf32>, vector<64x112xf32>, vector<24x112xf32> -> vector<24x112xf32>
    %c0_100 = arith.constant 0 : index
    %c0_101 = arith.constant 0 : index
    %184 = vector.load %arg15[%c0_100, %c0_101] : memref<1x112xf32, #tpu.memory_space<vmem>>, vector<1x112xf32>
    %185 = vector.broadcast %184 : vector<1x112xf32> to vector<24x112xf32>
    %186 = arith.addf %183, %185 : vector<24x112xf32>
    %cst_102 = arith.constant 0.000000e+00 : f32
    %187 = vector.broadcast %cst_102 : f32 to vector<24x112xf32>
    %188 = arith.maximumf %186, %187 : vector<24x112xf32>
    %c0_103 = arith.constant 0 : index
    %c0_104 = arith.constant 0 : index
    %189 = vector.load %arg16[%c0_103, %c0_104] : memref<112x32xf32, #tpu.memory_space<vmem>>, vector<112x32xf32>
    %cst_105 = arith.constant dense<0.000000e+00> : vector<24x32xf32>
    %190 = tpu.matmul %188, %189, %cst_105 {dimension_numbers = #tpu.dot_dimension_numbers<[1], [0], [0], [1], [0, 0, 1, 1], [], []>} : vector<24x112xf32>, vector<112x32xf32>, vector<24x32xf32> -> vector<24x32xf32>
    %c0_106 = arith.constant 0 : index
    %c0_107 = arith.constant 0 : index
    %191 = vector.load %arg17[%c0_106, %c0_107] : memref<1x32xf32, #tpu.memory_space<vmem>>, vector<1x32xf32>
    %192 = vector.broadcast %191 : vector<1x32xf32> to vector<24x32xf32>
    %193 = arith.addf %190, %192 : vector<24x32xf32>
    %cst_108 = arith.constant 0.000000e+00 : f32
    %194 = vector.broadcast %cst_108 : f32 to vector<24x32xf32>
    %195 = arith.maximumf %193, %194 : vector<24x32xf32>
    %196 = arith.mulf %170, %178 : vector<8x1xf32>
    %197 = vector.extract_strided_slice %195 {offsets = [0, 0], sizes = [8, 32], strides = [1, 1]} : vector<24x32xf32> to vector<8x32xf32>
    %198 = vector.broadcast %196 : vector<8x1xf32> to vector<8x32xf32>
    %199 = arith.mulf %198, %197 : vector<8x32xf32>
    %200 = arith.mulf %172, %178 : vector<8x1xf32>
    %201 = vector.extract_strided_slice %195 {offsets = [8, 0], sizes = [8, 32], strides = [1, 1]} : vector<24x32xf32> to vector<8x32xf32>
    %202 = vector.broadcast %200 : vector<8x1xf32> to vector<8x32xf32>
    %203 = arith.mulf %202, %201 : vector<8x32xf32>
    %204 = arith.mulf %174, %178 : vector<8x1xf32>
    %205 = vector.extract_strided_slice %195 {offsets = [16, 0], sizes = [8, 32], strides = [1, 1]} : vector<24x32xf32> to vector<8x32xf32>
    %206 = vector.broadcast %204 : vector<8x1xf32> to vector<8x32xf32>
    %207 = arith.mulf %206, %205 : vector<8x32xf32>
    %208 = tpu.concatenate %199, %203, %207 in 1 : vector<8x32xf32>, vector<8x32xf32>, vector<8x32xf32> -> vector<8x96xf32>
    %cst_109 = arith.constant dense<0.000000e+00> : vector<8x128xf32>
    %209 = tpu.matmul %208, %120, %cst_109 {dimension_numbers = #tpu.dot_dimension_numbers<[1], [0], [0], [1], [0, 0, 1, 1], [], []>} : vector<8x96xf32>, vector<96x128xf32>, vector<8x128xf32> -> vector<8x128xf32>
    %c0_110 = arith.constant 0 : index
    %c0_111 = arith.constant 0 : index
    %210 = vector.load %arg18[%c0_110, %c0_111] : memref<1x128xf32, #tpu.memory_space<vmem>>, vector<1x128xf32>
    %211 = vector.broadcast %210 : vector<1x128xf32> to vector<8x128xf32>
    %212 = arith.addf %209, %211 : vector<8x128xf32>
    %c0_112 = arith.constant 0 : index
    %c0_113 = arith.constant 0 : index
    %213 = vector.load %arg19[%c0_112, %c0_113] : memref<8x128xf32, #tpu.memory_space<vmem>>, vector<8x128xf32>
    tpu.vector_store %arg19[%c0_112, %c0_113], %212 {strides = array<i32>} : memref<8x128xf32, #tpu.memory_space<vmem>>, vector<8x128xf32>,
    return
  }
  func.func @transform_0(%arg0: i32, %arg1: memref<16xi32, #tpu.memory_space<smem>>, %arg2: memref<16xi32, #tpu.memory_space<smem>>) -> (i32, i32) {
    %c0_i32 = arith.constant 0 : i32
    %c0_i32_0 = arith.constant 0 : i32
    %c0_i32_1 = arith.constant 0 : i32
    return %c0_i32, %c0_i32_0 : i32, i32
  }
  func.func @transform_1(%arg0: i32, %arg1: memref<16xi32, #tpu.memory_space<smem>>, %arg2: memref<16xi32, #tpu.memory_space<smem>>) -> (i32, i32) {
    %c0_i32 = arith.constant 0 : i32
    %c0_i32_0 = arith.constant 0 : i32
    %c0_i32_1 = arith.constant 0 : i32
    return %c0_i32, %c0_i32_0 : i32, i32
  }
  func.func @transform_2(%arg0: i32, %arg1: memref<16xi32, #tpu.memory_space<smem>>, %arg2: memref<16xi32, #tpu.memory_space<smem>>) -> (i32, i32) {
    %c0_i32 = arith.constant 0 : i32
    %c0_i32_0 = arith.constant 0 : i32
    %c0_i32_1 = arith.constant 0 : i32
    return %c0_i32, %c0_i32_0 : i32, i32
  }
  func.func @transform_3(%arg0: i32, %arg1: memref<16xi32, #tpu.memory_space<smem>>, %arg2: memref<16xi32, #tpu.memory_space<smem>>) -> (i32, i32) {
    %c0_i32 = arith.constant 0 : i32
    %c0_i32_0 = arith.constant 0 : i32
    %c0_i32_1 = arith.constant 0 : i32
    return %c0_i32, %c0_i32_0 : i32, i32
  }
  func.func @transform_4(%arg0: i32, %arg1: memref<16xi32, #tpu.memory_space<smem>>, %arg2: memref<16xi32, #tpu.memory_space<smem>>) -> (i32, i32) {
    %c0_i32 = arith.constant 0 : i32
    %c0_i32_0 = arith.constant 0 : i32
    %c0_i32_1 = arith.constant 0 : i32
    return %c0_i32, %c0_i32_0 : i32, i32
  }
  func.func @transform_5(%arg0: i32, %arg1: memref<16xi32, #tpu.memory_space<smem>>, %arg2: memref<16xi32, #tpu.memory_space<smem>>) -> (i32, i32) {
    %c0_i32 = arith.constant 0 : i32
    %c0_i32_0 = arith.constant 0 : i32
    %c0_i32_1 = arith.constant 0 : i32
    return %c0_i32, %c0_i32_0 : i32, i32
  }
  func.func @transform_6(%arg0: i32, %arg1: memref<16xi32, #tpu.memory_space<smem>>, %arg2: memref<16xi32, #tpu.memory_space<smem>>) -> (i32, i32) {
    %c0_i32 = arith.constant 0 : i32
    %c0_i32_0 = arith.constant 0 : i32
    %c0_i32_1 = arith.constant 0 : i32
    return %c0_i32, %c0_i32_0 : i32, i32
  }
  func.func @transform_7(%arg0: i32, %arg1: memref<16xi32, #tpu.memory_space<smem>>, %arg2: memref<16xi32, #tpu.memory_space<smem>>) -> (i32, i32) {
    %c0_i32 = arith.constant 0 : i32
    %c0_i32_0 = arith.constant 0 : i32
    %c0_i32_1 = arith.constant 0 : i32
    return %c0_i32, %c0_i32_0 : i32, i32
  }
  func.func @transform_8(%arg0: i32, %arg1: memref<16xi32, #tpu.memory_space<smem>>, %arg2: memref<16xi32, #tpu.memory_space<smem>>) -> (i32, i32) {
    %c0_i32 = arith.constant 0 : i32
    %c0_i32_0 = arith.constant 0 : i32
    %c0_i32_1 = arith.constant 0 : i32
    return %c0_i32, %c0_i32_0 : i32, i32
  }
  func.func @transform_9(%arg0: i32, %arg1: memref<16xi32, #tpu.memory_space<smem>>, %arg2: memref<16xi32, #tpu.memory_space<smem>>) -> (i32, i32) {
    %c0_i32 = arith.constant 0 : i32
    %c0_i32_0 = arith.constant 0 : i32
    %c0_i32_1 = arith.constant 0 : i32
    return %c0_i32, %c0_i32_0 : i32, i32
  }
  func.func @transform_10(%arg0: i32, %arg1: memref<16xi32, #tpu.memory_space<smem>>, %arg2: memref<16xi32, #tpu.memory_space<smem>>) -> (i32, i32) {
    %c0_i32 = arith.constant 0 : i32
    %c0_i32_0 = arith.constant 0 : i32
    %c0_i32_1 = arith.constant 0 : i32
    return %c0_i32, %c0_i32_0 : i32, i32
  }
  func.func @transform_11(%arg0: i32, %arg1: memref<16xi32, #tpu.memory_space<smem>>, %arg2: memref<16xi32, #tpu.memory_space<smem>>) -> (i32, i32) {
    %c0_i32 = arith.constant 0 : i32
    %c0_i32_0 = arith.constant 0 : i32
    %c0_i32_1 = arith.constant 0 : i32
    return %c0_i32, %c0_i32_0 : i32, i32
  }
  func.func @transform_12(%arg0: i32, %arg1: memref<16xi32, #tpu.memory_space<smem>>, %arg2: memref<16xi32, #tpu.memory_space<smem>>) -> (i32, i32) {
    %c0_i32 = arith.constant 0 : i32
    %c0_i32_0 = arith.constant 0 : i32
    %c0_i32_1 = arith.constant 0 : i32
    return %c0_i32, %c0_i32_0 : i32, i32
  }
  func.func @transform_13(%arg0: i32, %arg1: memref<16xi32, #tpu.memory_space<smem>>, %arg2: memref<16xi32, #tpu.memory_space<smem>>) -> (i32, i32) {
    %c0_i32 = arith.constant 0 : i32
    %c0_i32_0 = arith.constant 0 : i32
    %c0_i32_1 = arith.constant 0 : i32
    return %c0_i32, %c0_i32_0 : i32, i32
  }
  func.func @transform_14(%arg0: i32, %arg1: memref<16xi32, #tpu.memory_space<smem>>, %arg2: memref<16xi32, #tpu.memory_space<smem>>) -> (i32, i32) {
    %c0_i32 = arith.constant 0 : i32
    %c0_i32_0 = arith.constant 0 : i32
    %c0_i32_1 = arith.constant 0 : i32
    return %c0_i32, %c0_i32_0 : i32, i32
  }
  func.func @transform_15(%arg0: i32, %arg1: memref<16xi32, #tpu.memory_space<smem>>, %arg2: memref<16xi32, #tpu.memory_space<smem>>) -> (i32, i32) {
    %c0_i32 = arith.constant 0 : i32
    %c0_i32_0 = arith.constant 0 : i32
    %c0_i32_1 = arith.constant 0 : i32
    return %c0_i32, %c0_i32_0 : i32, i32
  }
  func.func @transform_16(%arg0: i32, %arg1: memref<16xi32, #tpu.memory_space<smem>>, %arg2: memref<16xi32, #tpu.memory_space<smem>>) -> (i32, i32) {
    %c0_i32 = arith.constant 0 : i32
    %c0_i32_0 = arith.constant 0 : i32
    return %arg0, %c0_i32 : i32, i32
  }
}

</mosaic_0001>

<bundles_post_ra>
// kernel: disenkgat_conve_forward.1
= control target key start
LH: loop header
LB: loop body
LE: loop exit
PB: predicated region body
PF: predicated region fallthrough
CT: control target
= control target key end

     0   :  { %s2742_s0 = inlined_call_operand.vmem [shape: s32[16], index: 0, kind: input, shape index: {}]   ;;  %s2743_s2 = inlined_call_operand.vmem [shape: f32[40,32], index: 2, kind: input, shape index: {}]   ;;  %s2744_s3 = inlined_call_operand.vmem [shape: f32[10,32], index: 3, kind: input, shape index: {}]   ;;  %s2745_s4 = inlined_call_operand.vmem [shape: f32[32,128], index: 4, kind: input, shape index: {}]   ;;  %s2746_s5 = inlined_call_operand.vmem [shape: f32[32,96], index: 5, kind: input, shape index: {}]   ;;  %s2747_s6 = inlined_call_operand.vmem [shape: f32[96,32], index: 6, kind: input, shape index: {}]   ;;  %s2748_s7 = inlined_call_operand.vmem [shape: f32[1,96], index: 7, kind: input, shape index: {}]   ;;  %s2749_s8 = inlined_call_operand.vmem [shape: f32[96,1], index: 8, kind: input, shape index: {}]   ;;  %s2750_s9 = inlined_call_operand.vmem [shape: f32[32,24], index: 9, kind: input, shape index: {}]   ;;  %s2751_s10 = inlined_call_operand.vmem [shape: f32[24,64], index: 10, kind: input, shape index: {}]   ;;  %s2752_s11 = inlined_call_operand.vmem [shape: f32[32,32], index: 11, kind: input, shape index: {}]   ;;  %s2753_s12 = inlined_call_operand.vmem [shape: f32[1,32], index: 12, kind: input, shape index: {}]   ;;  %s2754_s13 = inlined_call_operand.vmem [shape: f32[64,112], index: 13, kind: input, shape index: {}]   ;;  %s2755_s14 = inlined_call_operand.vmem [shape: f32[1,112], index: 14, kind: input, shape index: {}]   ;;  %s2756_s15 = inlined_call_operand.vmem [shape: f32[112,32], index: 15, kind: input, shape index: {}]   ;;  %s2757_s16 = inlined_call_operand.vmem [shape: f32[1,32], index: 16, kind: input, shape index: {}]   ;;  %s2758_s17 = inlined_call_operand.vmem [shape: f32[1,128], index: 17, kind: input, shape index: {}]   ;;  %s2759_s18 = inlined_call_operand.hbm [shape: f32[16,128], index: 18, kind: output, shape index: {}]   ;;  %s2760_s1 = inlined_call_operand.vmem [shape: s32[16], index: 1, kind: input, shape index: {}]  }
   0x1   :  { %2783 = sst [smem:[#allocation20_spill]] %s2742_s0  ;;  %s27_s19 = sshll.u32 %s2760_s1, 4  ;;  %s28_s19 = int_to_ptr.vmem [resolvable:$true] %s27_s19 }
   0x2   :  { %2784 = sst [smem:[#allocation21_spill]] %s2743_s2 }
   0x3   :  { %2785 = sst [smem:[#allocation22_spill]] %s2744_s3 }
   0x4   :  { %2786 = sst [smem:[#allocation23_spill]] %s2746_s5 }
   0x5   :  { %2787 = sst [smem:[#allocation24_spill]] %s2749_s8 }
   0x6   :  { %2788 = sst [smem:[#allocation25_spill]] %s2753_s12 }
   0x7   :  { %2789 = sst [smem:[#allocation26_spill]] %s2755_s14 }
   0x8   :  { %2790 = sst [smem:[#allocation27_spill]] %s2756_s15 }
   0x9   :  { %2791 = sst [smem:[#allocation28_spill]] %s2757_s16 }
   0xa   :  { %2792 = sst [smem:[#allocation29_spill]] %s2758_s17 }
   0xb   :  { %2793 = sst [smem:[#allocation30_spill]] %s2759_s18 }
   0xc   :  { %s2794_s29 = sld [smem:[#allocation20_spill]] }
  0x12   :  { %s23_s8 = sshll.u32 %s2794_s29, 4  ;;  %s24_s8 = int_to_ptr.vmem [resolvable:$true] %s23_s8 }
  0x13   :  { %s2025_s2 = scalar_lea.vmem %s24_s8, 16  ;;  %p2030_p1 = scmp.lt.s32.totalorder %s24_s8, %s24_s8 }
  0x14   :  { %p2026_p0 = scmp.ne.s32.totalorder %s24_s8, %s2025_s2  ;;  %p2031_p2 = scmp.lt.s32.totalorder %s2025_s2, %s2025_s2 }
  0x16   :  { %p2032_p3 = por %p2031_p2, %p2030_p1 }
  0x18   :  { %p2033_p4 = pnand %p2032_p3, %p2026_p0 }
  0x1a   :  { %2036 = shalt.err (!%p2033_p4)  }
  0x1b   :  { %s2113_s20 = smov [#allocation5]   ;;  %s2037_s21 = scalar_lea.vmem %s28_s19, 16 }
  0x1c   :  { %26 = dma.vmem_to_smem %s24_s8, 16, %s2113_s20, [#allocation4] }
  0x1d   :  { %p2038_p5 = scmp.ne.s32.totalorder %s28_s19, %s2037_s21  ;;  %p2042_p6 = scmp.lt.s32.totalorder %s28_s19, %s28_s19 }
  0x1e   :  { %p2043_p7 = scmp.lt.s32.totalorder %s2037_s21, %s2037_s21 }
  0x20   :  { %p2044_p8 = por %p2043_p7, %p2042_p6 }
  0x22   :  { %p2045_p9 = pnand %p2044_p8, %p2038_p5 }
  0x24   :  { %2048 = shalt.err (!%p2045_p9)  }
  0x25   :  { %s2114_s22 = smov [#allocation6]  }
  0x26   :  { %30 = dma.vmem_to_smem %s28_s19, 16, %s2114_s22, [#allocation4] }
  0x27   :  { %2091 = dma.done.wait [#allocation4], 32 }
  0x28   :  { %2092 = vsyncadd [#allocation4], 4294967264 }
  0x29   :  { %32 = sfence }
  0x2a   :  { %33 = vsyncpa [#allocation8], 0 }
  0x2b   :  { %35 = vsyncpa [#allocation8 + $0x1], 0  ;;  %s2223_s1 = smov 0   ;;  %s2225_s3 = smov 0  }
  0x2c   :  { %s2227_s23 = smov 0   ;;  %s2229_s8 = smov 0  }
  0x2d LB: > { %2795 = sst [smem:[#allocation11_spill]] %s2099_s1  ;;  %s2244_s24 = sadd.s32 4294967295, %s2111_s8   ;;  %s2111_s8 = sphi %s2229_s8, %s2829_s8   ;;  %s2107_s23 = sphi %s2227_s23, %s2832_s23   ;;  %s2103_s3 = sphi %s2225_s3, %s2831_s3   ;;  %s2099_s1 = sphi %s2223_s1, %s2830_s1  }
  0x2e   : > { %2796 = sst [smem:[#allocation12_spill]] %s2103_s3  ;;  %s1659_s25 = sadd.s32 4294967294, %s2111_s8  }
  0x2f   : > { %2797 = sst [smem:[#allocation13_spill]] %s2107_s23  ;;  %s2248_s26 = sadd.s32 1, %s2111_s8  }
  0x30   : > { %2798 = sst [smem:[#allocation14_spill]] %s2111_s8  ;;  %s384_s27 = sadd.s32 1, %s2107_s23 }
  0x31   : > { %2799 = sst [smem:[#allocation15_spill]] %s2244_s24  ;;  %s381_s28 = ssub.s32 %s2111_s8, %s2248_s26 }
  0x32   : > { %2800 = sst [smem:[#allocation16_spill]] %s2248_s26  ;;  %p394_p10 = scmp.ne.s32.totalorder %s2107_s23, %s2103_s3 }
  0x33   : > { %p382_p11 = scmp.eq.s32.totalorder %s381_s28, 0  ;;  %p395_p12 = scmp.eq.s32.totalorder %s2244_s24, 1 }
  0x34   : > { %p400_p13 = scmp.ne.s32.totalorder %s2103_s3, %s2099_s1  ;;  %p401_p0 = scmp.eq.s32.totalorder %s1659_s25, 1 }
  0x35   : > { %s2259_s29 = scalar_select %p382_p11, %s2107_s23, %s384_s27  }
  0x36   : > { %p2261_p1 = por %p395_p12, %p394_p10  ;;  %p2265_p2 = por %p401_p0, %p400_p13 }
  0x37   : > { %2801 = sst [smem:[#allocation17_spill]] %s2259_s29  ;;  %p1661_p3 = scmp.ge.s32.totalorder %s2111_s8, 1 }
  0x38   : > { %s2802_s30 = scalar_select %p2261_p1, 1, 0 }
  0x39   : > { %s2804_s0 = scalar_select %p2265_p2, 1, 0 }
  0x3a   : > { %2803 = sst [smem:[#allocation18_spill]] %s2802_s30  ;;  %p467_p4 = scmp.lt.s32.totalorder %s2111_s8, 3 }
  0x3b   : > { %2805 = sst [smem:[#allocation19_spill]] %s2804_s0 }
  0x3c   : > { %p468_p5 = pnand %p1661_p3, %p467_p4 }
  0x3d   : > { %s2806_s5 = sld [smem:[#allocation23_spill]] (!%p468_p5)  ;;  %s2275_s20 = sshll.u32 (!%p468_p5), %s2244_s24, 3 }
  0x3e   : > { %471 = sbr.rel (%p468_p5) target bundleno = 1974 (0x7b6), region = 84  ;;  %s513_s25 = sld [smem:[#allocation5 + %s2275_s20]] (!%p468_p5) }
  0x3f   : > { %s2767_s27 = sadd.s32 (!%p468_p5), 1, %s2275_s20  ;;  %s2770_s19 = sadd.s32 (!%p468_p5), 2, %s2275_s20 }
  0x40   : > { %s523_s28 = sld [smem:[#allocation5 + %s2767_s27]] (!%p468_p5)  ;;  %s2771_s22 = sadd.s32 (!%p468_p5), 3, %s2275_s20 }
  0x41   : > { %s532_s21 = sld [smem:[#allocation5 + %s2770_s19]] (!%p468_p5)  ;;  %s2776_s26 = sadd.s32 (!%p468_p5), 4, %s2275_s20 }
  0x42   : > { %s541_s23 = sld [smem:[#allocation5 + %s2771_s22]] (!%p468_p5)  ;;  %s2777_s29 = sadd.s32 (!%p468_p5), 5, %s2275_s20 }
  0x43   : > { %v852_v0 = vld [vmem:[%s2806_s5 + $0x18] sm:$0xff]  ;;  %v2115_v1 = vmov 0.0   ;;  %v851_v2 = vld [vmem:[%s2806_s5 + $0x10] sm:$0xff]  ;;  %vm2116_vm0 = vmmov 0   ;;  %v850_v3 = vld [vmem:[%s2806_s5 + $0x8] sm:$0xff]  ;;  %s550_s1 = sld [smem:[#allocation5 + %s2776_s26]] }
  0x44   : > { %1808 = vmatprep.subr.mxu1 %v2115_v1  ;;  %1816 = vmatprep.mubr.msk.f32.mxu1 %vm2116_vm0, %v2115_v1  ;;  %v849_v4 = vld [vmem:[%s2806_s5] sm:$0xff]  ;;  %vm517_vm1 = vcmask 253952   ;;  %s559_s2 = sld [smem:[#allocation5 + %s2777_s29]]  ;;  %s2781_s19 = sadd.s32 6, %s2275_s20  ;;  %vm675_vm2 = vcmask 261120   ;;  %v940_v23 = vld [vmem:[%s2750_s9 + $0x18] sm:$0xff] }
  0x45   : > { %1809 = vmatpush3.msra.mxu1 %v852_v0  ;;  %s2807_s18 = sld [smem:[#allocation21_spill]]  ;;  %s2780_s5 = sadd.s32 7, %s2275_s20  ;;  %v939_v24 = vld [vmem:[%s2750_s9 + $0x10] sm:$0xff]  ;;  %v938_v25 = vld [vmem:[%s2750_s9 + $0x8] sm:$0xff]  ;;  %v937_v26 = vld [vmem:[%s2750_s9] sm:$0xff]  ;;  %vm1030_vm3 = vcmask 195584  }
  0x46   : > { %1810 = vmatprep.subr.mxu1 %v2115_v1  ;;  %s568_s30 = sld [smem:[#allocation5 + %s2781_s19]]  ;;  %s2810_s0 = sadd.s32 3, %s2275_s20  ;;  %v1676_v28 = vld [vmem:[%s2748_s7] ss:$0 sm:$0xff]  ;;  %v1029_v35 = vld [vmem:[%s2751_s10 + $0x10] sm:$0xff]  ;;  %v1028_v36 = vld [vmem:[%s2751_s10 + $0x8] sm:$0xff] }
  0x47   : > { %1811 = vmatpush3.msra.mxu1 %v851_v2  ;;  %s577_s8 = sld [smem:[#allocation5 + %s2780_s5]]  ;;  %s2815_s15 = sadd.s32 7, %s2275_s20  ;;  %v1027_v37 = vld [vmem:[%s2751_s10] sm:$0xff]  ;;  %v1121_v42 = vld [vmem:[%s2752_s11 + $0x18] sm:$0xff]  ;;  %v1120_v43 = vld [vmem:[%s2752_s11 + $0x10] sm:$0xff]  ;;  %vm1277_vm4 = vcmask 523264  }
  0x48   : > { %1812 = vmatprep.subr.mxu1 %v2115_v1  ;;  %s578_s12 = sld [smem:[#allocation6 + %s2815_s15]]  ;;  %v1119_v44 = vld [vmem:[%s2752_s11 + $0x8] sm:$0xff]  ;;  %v1118_v45 = vld [vmem:[%s2752_s11] sm:$0xff]  ;;  %v602_v50 = vld [vmem:[%s2745_s4 + $0x18] sm:$0xff]  ;;  %vm1391_vm5 = vcmask 916480   ;;  %vm1507_vm6 = vcmask 785408  }
  0x49   : > { %1813 = vmatpush3.msra.mxu1 %v850_v3  ;;  %v601_v51 = vld [vmem:[%s2745_s4 + $0x10] sm:$0xff]  ;;  %1782 = vmatprep.subr.mxu0 %v602_v50  ;;  %v587_v52 = vld [vmem:[%s2747_s6] sm:$0xff]  ;;  %v600_v53 = vld [vmem:[%s2745_s4 + $0x8] sm:$0xff] }
  0x4a   : > { %1814 = vmatprep.subr.mxu1 %v2115_v1  ;;  %1783 = vmatpush3.msra.mxu0 %v602_v50  ;;  %v599_v54 = vld [vmem:[%s2745_s4] sm:$0xff]  ;;  %v588_v55 = vld [vmem:[%s2747_s6 + $0x8] sm:$0xff]  ;;  %v589_v56 = vld [vmem:[%s2747_s6 + $0x10] sm:$0xff] }
  0x4b   : > { %s515_s17 = scalar_lea.vmem %s2807_s18, %s513_s25  ;;  %1815 = vmatpush3.msra.mxu1 %v849_v4  ;;  %s525_s26 = scalar_lea.vmem %s2807_s18, %s523_s28  ;;  %1790 = vmatprep.mubr.msk.f32.mxu0 %vm675_vm2, %v587_v52  ;;  %v1269_v57 = vld [vmem:[%s2754_s13 + $0x38] sm:$0xff]  ;;  %v1268_v58 = vld [vmem:[%s2754_s13 + $0x30] sm:$0xff]  ;;  %v591_v60 = vld [vmem:[%s2747_s6 + $0x20] sm:$0xff] }
  0x4c   : > { %v516_v5 = vld [vmem:[%s515_s17] sm:$0x1]  ;;  %s534_s3 = scalar_lea.vmem %s2807_s18, %s532_s21  ;;  %s543_s22 = scalar_lea.vmem %s2807_s18, %s541_s23  ;;  %1819 = vmatprep.subr.mxu1 %v940_v23  ;;  %1784 = vmatprep.subr.mxu0 %v601_v51  ;;  %v590_v59 = vld [vmem:[%s2747_s6 + $0x18] sm:$0xff]  ;;  %v1267_v61 = vld [vmem:[%s2754_s13 + $0x28] sm:$0xff] }
  0x4d   : > { %518 = vst.msk [vmem:[#allocation2] sm:$0x1] %vm517_vm1, %v516_v5  ;;  %v526_v6 = vld [vmem:[%s525_s26] sm:$0x1]  ;;  %s514_s28 = sld [smem:[#allocation6 + %s2275_s20]]  ;;  %s552_s24 = scalar_lea.vmem %s2807_s18, %s550_s1  ;;  %1785 = vmatpush3.msra.mxu0 %v601_v51  ;;  %v592_v63 = vld [vmem:[%s2747_s6 + $0x28] sm:$0xff] }
  0x4e   : > { %527 = vst.msk [vmem:[#allocation2 + $0x1] sm:$0x1] %vm517_vm1, %v526_v6  ;;  %v535_v7 = vld [vmem:[%s534_s3] sm:$0x1]  ;;  %s2808_s21 = sadd.s32 1, %s2275_s20  ;;  %s561_s23 = scalar_lea.vmem %s2807_s18, %s559_s2  ;;  %1786 = vmatprep.subr.mxu0 %v600_v53  ;;  %v593_v0 = vld [vmem:[%s2747_s6 + $0x30] sm:$0xff] }
  0x4f   : > { %536 = vst.msk [vmem:[#allocation2 + $0x2] sm:$0x1] %vm517_vm1, %v535_v7  ;;  %v544_v8 = vld [vmem:[%s543_s22] sm:$0x1]  ;;  %s524_s29 = sld [smem:[#allocation6 + %s2808_s21]]  ;;  %s2809_s17 = sadd.s32 2, %s2275_s20  ;;  %1787 = vmatpush3.msra.mxu0 %v600_v53 }
  0x50   : > { %545 = vst.msk [vmem:[#allocation2 + $0x3] sm:$0x1] %vm517_vm1, %v544_v8  ;;  %v553_v9 = vld [vmem:[%s552_s24] sm:$0x1]  ;;  %s533_s25 = sld [smem:[#allocation6 + %s2809_s17]]  ;;  %s570_s1 = scalar_lea.vmem %s2807_s18, %s568_s30  ;;  %1788 = vmatprep.subr.mxu0 %v599_v54  ;;  %v1265_v2 = vld [vmem:[%s2754_s13 + $0x18] sm:$0xff] }
  0x51   : > { %554 = vst.msk [vmem:[#allocation2 + $0x4] sm:$0x1] %vm517_vm1, %v553_v9  ;;  %v562_v10 = vld [vmem:[%s561_s23] sm:$0x1]  ;;  %s542_s21 = sld [smem:[#allocation6 + %s2810_s0]]  ;;  %s2811_s24 = sadd.s32 4, %s2275_s20  ;;  %1789 = vmatpush3.msra.mxu0 %v599_v54 }
  0x52   : > { %563 = vst.msk [vmem:[#allocation2 + $0x5] sm:$0x1] %vm517_vm1, %v562_v10  ;;  %v571_v11 = vld [vmem:[%s570_s1] sm:$0x1]  ;;  %s551_s5 = sld [smem:[#allocation6 + %s2811_s24]]  ;;  %s579_s27 = scalar_lea.vmem %s2807_s18, %s577_s8  ;;  %1791 = vmatmul.mubr.msk.f32.vlgmr.msra.gmra.mxu0 %vm675_vm2, %v588_v55  ;;  %1853 = vmatprep.subr.mxu0 %v2115_v1  ;;  %v1264_v3 = vld [vmem:[%s2754_s13 + $0x10] sm:$0xff] }
  0x53   : > { %572 = vst.msk [vmem:[#allocation2 + $0x6] sm:$0x1] %vm517_vm1, %v571_v11  ;;  %s2812_s17 = sadd.s32 5, %s2275_s20  ;;  %v580_v12 = vld [vmem:[%s579_s27] sm:$0x1]  ;;  %s2813_s22 = sld [smem:[#allocation22_spill]]  ;;  %1793 = vmatprep.mubr.msk.f32.mxu0 %vm675_vm2, %v589_v56  ;;  %1854 = vmatpush3.msra.mxu0 %v1269_v57 }
  0x54   : > { %s560_s19 = sld [smem:[#allocation6 + %s2812_s17]]  ;;  %s2814_s26 = sadd.s32 6, %s2275_s20  ;;  %581 = vst.msk [vmem:[#allocation2 + $0x7] sm:$0x1] %vm517_vm1, %v580_v12  ;;  %1855 = vmatprep.subr.mxu0 %v2115_v1  ;;  %v1266_v62 = vld [vmem:[%s2754_s13 + $0x20] sm:$0xff]  ;;  %v594_v4 = vld [vmem:[%s2747_s6 + $0x38] sm:$0xff] }
  0x55   : > { %s569_s0 = sld [smem:[#allocation6 + %s2814_s26]]  ;;  %s2118_s2 = smov 96   ;;  %1856 = vmatpush3.msra.mxu0 %v1268_v58  ;;  %v595_v5 = vld [vmem:[%s2747_s6 + $0x40] sm:$0xff]  ;;  %v1263_v6 = vld [vmem:[%s2754_s13 + $0x8] sm:$0xff]  ;;  %v597_v9 = vld [vmem:[%s2747_s6 + $0x50] sm:$0xff] }
  0x56   : > { %1794 = vmatmul.mubr.msk.f32.gmra.mxu0 %vm675_vm2, %v590_v59  ;;  %1857 = vmatprep.subr.mxu0 %v2115_v1  ;;  %v1262_v7 = vld [vmem:[%s2754_s13] sm:$0xff]  ;;  %v596_v8 = vld [vmem:[%s2747_s6 + $0x48] sm:$0xff]  ;;  %v598_v10 = vld [vmem:[%s2747_s6 + $0x58] sm:$0xff]  ;;  %s2120_s17 = smov 32   ;;  %s2818_s24 = sld [smem:[#allocation27_spill]] }
  0x57   : > { %1796 = vmatprep.mubr.msk.f32.mxu0 %vm675_vm2, %v591_v60  ;;  %1858 = vmatpush3.msra.mxu0 %v1267_v61  ;;  %s2821_s26 = sld [smem:[#allocation12_spill]] }
  0x58   : > { %1859 = vmatprep.subr.mxu0 %v2115_v1 }
  0x59   : > { %s519_s30 = scalar_lea.vmem %s2813_s22, %s514_s28  ;;  %s528_s14 = scalar_lea.vmem %s2813_s22, %s524_s29  ;;  %1860 = vmatpush3.msra.mxu0 %v1266_v62 }
  0x5a   : > { %v520_v13 = vld [vmem:[%s519_s30] sm:$0x1]  ;;  %s537_s3 = scalar_lea.vmem %s2813_s22, %s533_s25  ;;  %s546_s27 = scalar_lea.vmem %s2813_s22, %s542_s21  ;;  %1797 = vmatmul.mubr.msk.f32.gmra.mxu0 %vm675_vm2, %v592_v63  ;;  %1861 = vmatprep.subr.mxu0 %v2115_v1 }
  0x5b   : > { %521 = vst.msk [vmem:[#allocation3] sm:$0x1] %vm517_vm1, %v520_v13  ;;  %v529_v14 = vld [vmem:[%s528_s14] sm:$0x1]  ;;  %s555_s15 = scalar_lea.vmem %s2813_s22, %s551_s5  ;;  %s564_s25 = scalar_lea.vmem %s2813_s22, %s560_s19  ;;  %1799 = vmatprep.mubr.msk.f32.mxu0 %vm675_vm2, %v593_v0  ;;  %1862 = vmatpush3.msra.mxu0 %v1265_v2 }
  0x5c   : > { %530 = vst.msk [vmem:[#allocation3 + $0x1] sm:$0x1] %vm517_vm1, %v529_v14  ;;  %v538_v15 = vld [vmem:[%s537_s3] sm:$0x1]  ;;  %s573_s30 = scalar_lea.vmem %s2813_s22, %s569_s0  ;;  %s582_s1 = scalar_lea.vmem %s2813_s22, %s578_s12  ;;  %1863 = vmatprep.subr.mxu0 %v2115_v1 }
  0x5d   : > { %539 = vst.msk [vmem:[#allocation3 + $0x2] sm:$0x1] %vm517_vm1, %v538_v15  ;;  %v547_v16 = vld [vmem:[%s546_s27] sm:$0x1]  ;;  %s2117_s19 = smov 64   ;;  %1864 = vmatpush3.msra.mxu0 %v1264_v3  ;;  %s2816_s14 = sld [smem:[#allocation25_spill]] }
  0x5e   : > { %548 = vst.msk [vmem:[#allocation3 + $0x3] sm:$0x1] %vm517_vm1, %v547_v16  ;;  %v556_v17 = vld [vmem:[%s555_s15] sm:$0x1]  ;;  %1800 = vmatmul.mubr.msk.f32.gmra.mxu0 %vm675_vm2, %v594_v4  ;;  %1865 = vmatprep.subr.mxu0 %v2115_v1  ;;  %v2119_v15 = vmov 0   ;;  %s2817_s21 = sld [smem:[#allocation24_spill]] }
  0x5f   : > { %557 = vst.msk [vmem:[#allocation3 + $0x4] sm:$0x1] %vm517_vm1, %v556_v17  ;;  %v565_v18 = vld [vmem:[%s564_s25] sm:$0x1]  ;;  %1802 = vmatprep.mubr.msk.f32.mxu0 %vm675_vm2, %v595_v5  ;;  %1866 = vmatpush3.msra.mxu0 %v1263_v6  ;;  %s2822_s5 = sld [smem:[#allocation15_spill]]  ;;  %s509_s0 = sand.u32 1, %s2821_s26  }
  0x60   : > { %566 = vst.msk [vmem:[#allocation3 + $0x5] sm:$0x1] %vm517_vm1, %v565_v18  ;;  %v574_v19 = vld [vmem:[%s573_s30] sm:$0x1]  ;;  %1867 = vmatprep.subr.mxu0 %v2115_v1  ;;  %1990 = vset.pattern.permute.xlu1 %v2119_v15  ;;  %s2820_s30 = sld [smem:[#allocation28_spill]]  ;;  %s1662_s8 = sshll.u32 %s509_s0, 3 }
  0x61   : > { %v585_v20 = vld [vmem:[#allocation2] sm:$0xff]  ;;  %575 = vst.msk [vmem:[#allocation3 + $0x6] sm:$0x1] %vm517_vm1, %v574_v19  ;;  %1868 = vmatpush3.msra.mxu0 %v1262_v7  ;;  %1989 = vset.pattern.permute.xlu0 %v2119_v15  ;;  %s2824_s3 = sld [smem:[#allocation29_spill]]  ;;  %s1583_s15 = scalar_lea.sflag [#allocation8], %s509_s0 }
  0x62   : > { %v583_v21 = vld [vmem:[%s582_s1] sm:$0x1]  ;;  %1817 = vmatmul.mubr.msk.f32.vlgmr.msra.gmra.mxu1 %vm675_vm2, %v585_v20  ;;  %1803 = vmatmul.mubr.msk.f32.gmra.mxu0 %vm675_vm2, %v596_v8  ;;  %s2825_s29 = sld [smem:[#allocation30_spill]]  ;;  %s2121_s25 = smov [#allocation7]  }
  0x63   : > { %584 = vst.msk [vmem:[#allocation3 + $0x7] sm:$0x1] %vm517_vm1, %v583_v21  ;;  %1820 = vmatpush3.msra.mxu1 %v940_v23  ;;  %1915 = vmatprep.subr.mxu0 %v2115_v1  ;;  %v1682_v13 = vld [vmem:[%s2816_s14] ss:$0 sm:$0xff]  ;;  %s2819_s14 = sld [smem:[#allocation26_spill]]  ;;  %s2053_s23 = sshll.u32 %s2121_s25, 4  ;;  %s2054_s23 = int_to_ptr.vmem [resolvable:$false] %s2053_s23 }
  0x64   : > { %1821 = vmatprep.subr.mxu1 %v939_v24  ;;  %1805 = vmatprep.mubr.msk.f32.mxu0 %vm675_vm2, %v597_v9 }
  0x65   : > { %1822 = vmatpush3.msra.mxu1 %v939_v24  ;;  %v614_v24 = vld [vmem:[%s2817_s21 + $0x58] sm:$0xff]  ;;  %s1698_s16 = sshll.u32 %s2822_s5, 7 }
  0x66   : > { %1823 = vmatprep.subr.mxu1 %v938_v25  ;;  %1806 = vmatmul.mubr.msk.f32.gmra.mxu0 %vm675_vm2, %v598_v10 }
  0x67   : > { %1824 = vmatpush3.msra.mxu1 %v938_v25  ;;  %1869 = vmatprep.mubr.msk.f32.mxu0 %vm2116_vm0, %v2115_v1 }
  0x68   : > { %1825 = vmatprep.subr.mxu1 %v937_v26  ;;  %s2707_s20 = scalar_lea.hbm %s2825_s29, %s1698_s16 }
  0x69   : > { %1826 = vmatpush3.msra.mxu1 %v937_v26  ;;  %v605_v26 = vld [vmem:[%s2817_s21 + $0x10] sm:$0xff] }
  0x6a   : > { %v586_v22 = vld [vmem:[#allocation3] sm:$0xff]  ;;  %1830 = vmatprep.subr.mxu1 %v1029_v35 }
  0x6b   : > { %935 = vrot.lane.b32.xlu0 %v586_v22, %s2117_s19 }
  0xdd   : > { %v936_v27 = vpop.permute.xlu0 %935 }
  0xde   : > { %944 = vrot.lane.b32.xlu1 %v936_v27, %s2117_s19 }
 0x112   : > { %v2633_v50 = vpop.f32.mrf.mxu0 }
 0x114   : > { %v2635_v52 = vpop.f32.mrf.mxu0 }
 0x116   : > { %v2642_v54 = vpop.f32.mrf.mxu0 }
 0x118   : > { %v2649_v56 = vpop.f32.mrf.mxu0 }
 0x11a   : > { %v1798_v58 = vpop.f32.mrf.mxu0 }
 0x11c   : > { %v2656_v59 = vpop.f32.mrf.mxu0 }
 0x11e   : > { %v1801_v60 = vpop.f32.mrf.mxu0 }
 0x120   : > { %v808_v61 = vpop.f32.mrf.mxu0 }
 0x122   : > { %v929_v29 = vpop.f32.mrf.mxu1  ;;  %v1804_v63 = vpop.f32.mrf.mxu0 }
 0x123   : > { %v930_v30 = vadd.f32 %v1676_v28, %v929_v29  ;;  %v603_v28 = vld [vmem:[%s2817_s21] sm:$0xff] }
 0x124   : > { %v1818_v31 = vpop.f32.mrf.mxu1  ;;  %v818_v0 = vpop.f32.mrf.mxu0 }
 0x125   : > { %1991 = vtanh.f32 %v930_v30  ;;  %v613_v30 = vld [vmem:[%s2817_s21 + $0x50] sm:$0xff]  ;;  %v612_v31 = vld [vmem:[%s2817_s21 + $0x48] sm:$0xff] }
 0x126   : > { %v1807_v3 = vpop.f32.mrf.mxu0 }
 0x132   : > { %v1992_v32 = vpop.eup %1991 }
 0x133   : > { %942 = vrot.lane.b32.xlu0 %v1992_v32, %s2117_s19  ;;  %v611_v32 = vld [vmem:[%s2817_s21 + $0x40] sm:$0xff] }
 0x150   : > { %v945_v33 = vpop.permute.xlu1 %944 }
 0x1a5   : > { %v943_v34 = vpop.permute.xlu0 %942 }
 0x1a6   : > { %1827 = vmatprep.mubr.msk.f32.mxu1 %vm675_vm2, %v943_v34  ;;  %v609_v34 = vld [vmem:[%s2817_s21 + $0x30] sm:$0xff] }
 0x1a7   : > { %1828 = vmatmul.mubr.msk.f32.vlgmr.msra.gmra.mxu1 %vm675_vm2, %v945_v33  ;;  %v610_v33 = vld [vmem:[%s2817_s21 + $0x38] sm:$0xff] }
 0x1a8   : > { %1831 = vmatpush3.msra.mxu1 %v1029_v35  ;;  %v608_v35 = vld [vmem:[%s2817_s21 + $0x28] sm:$0xff] }
 0x1a9   : > { %1832 = vmatprep.subr.mxu1 %v1028_v36 }
 0x1aa   : > { %1833 = vmatpush3.msra.mxu1 %v1028_v36  ;;  %v607_v36 = vld [vmem:[%s2817_s21 + $0x20] sm:$0xff] }
 0x1ab   : > { %1834 = vmatprep.subr.mxu1 %v1027_v37 }
 0x1ac   : > { %1835 = vmatpush3.msra.mxu1 %v1027_v37  ;;  %v606_v37 = vld [vmem:[%s2817_s21 + $0x18] sm:$0xff] }
 0x1ad   : > { %1839 = vmatprep.subr.mxu1 %v1121_v42 }
 0x267   : > { %v1829_v38 = vpop.f32.mrf.mxu1 }
 0x268   : > { %v1026_v41 = vmax.f32 %v1829_v38, 0.0  ;;  %v604_v38 = vld [vmem:[%s2817_s21 + $0x8] sm:$0xff] }
 0x269   : > { %v1016_v39 = vpop.f32.mrf.mxu1 }
 0x26a   : > { %v1025_v40 = vmax.f32 %v1016_v39, 0.0  ;;  %v1383_v39 = vld [vmem:[%s2818_s24 + $0x68] sm:$0xff] }
 0x26c   : > { %1836 = vmatprep.mubr.msk.f32.mxu1 %vm1030_vm3, %v1025_v40  ;;  %v1382_v40 = vld [vmem:[%s2818_s24 + $0x60] sm:$0xff] }
 0x26d   : > { %1837 = vmatmul.mubr.msk.f32.vlgmr.msra.gmra.mxu1 %vm1030_vm3, %v1026_v41  ;;  %v1381_v41 = vld [vmem:[%s2818_s24 + $0x58] sm:$0xff] }
 0x26e   : > { %1840 = vmatpush3.msra.mxu1 %v1121_v42  ;;  %v1380_v42 = vld [vmem:[%s2818_s24 + $0x50] sm:$0xff] }
 0x26f   : > { %1841 = vmatprep.subr.mxu1 %v1120_v43 }
 0x270   : > { %1842 = vmatpush3.msra.mxu1 %v1120_v43  ;;  %v1379_v43 = vld [vmem:[%s2818_s24 + $0x48] sm:$0xff] }
 0x271   : > { %1843 = vmatprep.subr.mxu1 %v1119_v44 }
 0x272   : > { %1844 = vmatpush3.msra.mxu1 %v1119_v44  ;;  %v1378_v44 = vld [vmem:[%s2818_s24 + $0x40] sm:$0xff] }
 0x273   : > { %1845 = vmatprep.subr.mxu1 %v1118_v45 }
 0x274   : > { %1846 = vmatpush3.msra.mxu1 %v1118_v45  ;;  %v1377_v45 = vld [vmem:[%s2818_s24 + $0x38] sm:$0xff] }
 0x275   : > { %1878 = vmatprep.subr.mxu1 %v2115_v1 }
 0x32d   : > { %v1838_v46 = vpop.f32.mrf.mxu1 }
 0x32e   : > { %1116 = vrot.lane.b32.xlu0 %v1838_v46, %s2118_s2 }
 0x32f   : > { %v1103_v47 = vpop.f32.mrf.mxu1 }
 0x330   : > { %1113 = vrot.lane.b32.xlu1 %v1103_v47, %s2118_s2  ;;  %1847 = vmatprep.mubr.msk.f32.mxu1 %vm675_vm2, %v1103_v47  ;;  %v1375_v47 = vld [vmem:[%s2818_s24 + $0x28] sm:$0xff] }
 0x3a0   : > { %v1117_v49 = vpop.permute.xlu0 %1116 }
 0x3a2   : > { %v1114_v48 = vpop.permute.xlu1 %1113 }
 0x3a3   : > { %1848 = vmatmul.mubr.msk.f32.vlgmr.msra.gmra.mxu1 %vm675_vm2, %v1114_v48  ;;  %v1374_v48 = vld [vmem:[%s2818_s24 + $0x20] sm:$0xff] }
 0x3a4   : > { %1850 = vmatprep.mubr.msk.f32.mxu1 %vm675_vm2, %v1838_v46  ;;  %1879 = vmatpush3.msra.mxu1 %v1383_v39  ;;  %v1376_v46 = vld [vmem:[%s2818_s24 + $0x30] sm:$0xff] }
 0x3a5   : > { %1880 = vmatprep.subr.mxu1 %v2115_v1 }
 0x3a6   : > { %1881 = vmatpush3.msra.mxu1 %v1382_v40 }
 0x3a7   : > { %1851 = vmatmul.mubr.msk.f32.gmra.mxu1 %vm675_vm2, %v1117_v49  ;;  %1882 = vmatprep.subr.mxu1 %v2115_v1  ;;  %v1373_v49 = vld [vmem:[%s2818_s24 + $0x18] sm:$0xff] }
 0x3a8   : > { %1906 = vmatprep.mubr.msk.f32.mxu1 %vm2116_vm0, %v2115_v1  ;;  %1883 = vmatpush3.msra.mxu1 %v1381_v41 }
 0x3a9   : > { %1884 = vmatprep.subr.mxu1 %v2115_v1 }
 0x3aa   : > { %1885 = vmatpush3.msra.mxu1 %v1380_v42 }
 0x3ab   : > { %1886 = vmatprep.subr.mxu1 %v2115_v1 }
 0x3ac   : > { %1887 = vmatpush3.msra.mxu1 %v1379_v43 }
 0x3ad   : > { %1888 = vmatprep.subr.mxu1 %v2115_v1 }
 0x3ae   : > { %1889 = vmatpush3.msra.mxu1 %v1378_v44 }
 0x3af   : > { %1890 = vmatprep.subr.mxu1 %v2115_v1 }
 0x3b0   : > { %1891 = vmatpush3.msra.mxu1 %v1377_v45 }
 0x3b1   : > { %1892 = vmatprep.subr.mxu1 %v2115_v1 }
 0x3b2   : > { %1893 = vmatpush3.msra.mxu1 %v1376_v46 }
 0x3b3   : > { %1894 = vmatprep.subr.mxu1 %v2115_v1 }
 0x3b4   : > { %1895 = vmatpush3.msra.mxu1 %v1375_v47 }
 0x3b5   : > { %1896 = vmatprep.subr.mxu1 %v2115_v1 }
 0x3b6   : > { %1897 = vmatpush3.msra.mxu1 %v1374_v48 }
 0x3b7   : > { %1898 = vmatprep.subr.mxu1 %v2115_v1 }
 0x3b8   : > { %1899 = vmatpush3.msra.mxu1 %v1373_v49 }
 0x3b9   : > { %1900 = vmatprep.subr.mxu1 %v2115_v1 }
 0x463   : > { %v1849_v11 = vpop.f32.mrf.mxu1 }
 0x464   : > { %v2552_v25 = vadd.f32 %v1849_v11, %v1682_v13  ;;  %v828_v11 = vpop.f32.mrf.mxu0 }
 0x465   : > { %v1203_v12 = vpop.f32.mrf.mxu1 }
 0x466   : > { %v2540_v16 = vadd.f32 %v1682_v13, %v1203_v12 }
 0x467   : > { %v1852_v14 = vpop.f32.mrf.mxu1 }
 0x468   : > { %v1219_v17 = vadd.f32 %v1852_v14, %v1682_v13 }
 0x469   : > { %v1213_v18 = vpop.f32.mrf.mxu1 }
 0x46a   : > { %v2542_v19 = vadd.f32 %v1682_v13, %v1213_v18  ;;  %1256 = vrot.lane.b32.xlu1 %v1219_v17, %s2120_s17  ;;  %v1222_v20 = vmul.f32 %v1219_v17, %v2540_v16  ;;  %v1228_v27 = vmul.f32 %v1219_v17, %v2552_v25 }
 0x46c   : > { %v1223_v21 = vsel %vm675_vm2, %v1222_v20, 0.0  ;;  %v1234_v22 = vmul.f32 %v1219_v17, %v2542_v19  ;;  %v1229_v29 = vsel %vm675_vm2, %v1228_v27, 0.0  ;;  %v1372_v20 = vld [vmem:[%s2818_s24 + $0x10] sm:$0xff] }
 0x46d   : > { %1224 = vadd.xlane.f32.xlu0 %v1223_v21  ;;  %1901 = vmatpush3.msra.mxu1 %v1372_v20 }
 0x46e   : > { %v1235_v23 = vsel %vm675_vm2, %v1234_v22, 0.0  ;;  %1902 = vmatprep.subr.mxu1 %v2115_v1 }
 0x471   : > { %1236 = vadd.xlane.f32.xlu0 %v1235_v23 }
 0x487   : > { %672 = vperm.xlu0 %1989, %v614_v24  }
 0x48b   : > { %627 = vperm.xlu0 %1989, %v605_v26  }
 0x48e   : > { %1230 = vadd.xlane.f32.xlu1 %v1229_v29 }
 0x48f   : > { %617 = vperm.xlu0 %1989, %v603_v28  }
 0x49f   : > { %667 = vperm.xlu1 %1990, %v613_v30   ;;  %v1370_v30 = vld [vmem:[%s2818_s24] sm:$0xff] }
 0x4a3   : > { %662 = vperm.xlu1 %1990, %v612_v31  }
 0x4a7   : > { %657 = vperm.xlu1 %1990, %v611_v32  }
 0x4ab   : > { %652 = vperm.xlu1 %1990, %v610_v33  }
 0x4af   : > { %647 = vperm.xlu1 %1990, %v609_v34  }
 0x4b3   : > { %642 = vperm.xlu1 %1990, %v608_v35  }
 0x4b7   : > { %637 = vperm.xlu1 %1990, %v607_v36  }
 0x4bb   : > { %632 = vperm.xlu1 %1990, %v606_v37  }
 0x4bf   : > { %622 = vperm.xlu1 %1990, %v604_v38  }
 0x4dc   : > { %v1257_v51 = vpop.permute.xlu1 %1256 }
 0x4dd   : > { %v1259_v53 = vsel %vm675_vm2, %v2540_v16, %v1257_v51  ;;  %v1260_v55 = vsel %vm675_vm2, %v2552_v25, %v1257_v51  ;;  %v1261_v57 = vsel %vm675_vm2, %v2542_v19, %v1257_v51  ;;  %v1371_v25 = vld [vmem:[%s2818_s24 + $0x8] sm:$0xff] }
 0x4de   : > { %1870 = vmatmul.mubr.msk.f32.vlgmr.msra.gmra.mxu0 %vm1277_vm4, %v1259_v53  ;;  %1903 = vmatpush3.msra.mxu1 %v1371_v25 }
 0x4df   : > { %1872 = vmatprep.mubr.msk.f32.mxu0 %vm2116_vm0, %v2115_v1  ;;  %1904 = vmatprep.subr.mxu1 %v2115_v1 }
 0x4e0   : > { %1905 = vmatpush3.msra.mxu1 %v1370_v30 }
 0x4e2   : > { %1873 = vmatmul.mubr.msk.f32.gmra.mxu0 %vm1277_vm4, %v1260_v55 }
 0x4e3   : > { %1875 = vmatprep.mubr.msk.f32.mxu0 %vm2116_vm0, %v2115_v1 }
 0x4e6   : > { %1876 = vmatmul.mubr.msk.f32.gmra.mxu0 %vm1277_vm4, %v1261_v57 }
 0x4e7   : > { %1939 = vmatprep.mubr.msk.f32.mxu0 %vm2116_vm0, %v2115_v1 }
 0x4f6   : > { %v1225_v62 = vpop.xlane.xlu0 %1224 }
 0x4f7   : > { %v1226_v7 = vmul.f32 0.2, %v1225_v62 }
 0x4f9   : > { %v1227_v12 = vmax.f32 %v1225_v62, %v1226_v7 }
 0x4fa   : > { %v1237_v2 = vpop.xlane.xlu0 %1236 }
 0x4fb   : > { %v1238_v9 = vmul.f32 0.2, %v1237_v2 }
 0x4fd   : > { %v1239_v15 = vmax.f32 %v1237_v2, %v1238_v9 }
 0x502   : > { %v673_v4 = vpop.permute.xlu0 %672 }
 0x503   : > { %v834_v5 = vadd.f32 %v1807_v3, %v673_v4 }
 0x505   : > { %1993 = vtanh.f32 %v834_v5  ;;  %v1687_v5 = vld [vmem:[%s2819_s14] ss:$0 sm:$0xff] }
 0x506   : > { %v628_v40 = vpop.permute.xlu0 %627 }
 0x507   : > { %v789_v49 = vadd.f32 %v2649_v56, %v628_v40 }
 0x50a   : > { %v618_v51 = vpop.permute.xlu0 %617 }
 0x512   : > { %v1994_v6 = vpop.eup %1993 }
 0x513   : > { %1916 = vmatpush3.msra.mxu0 %v1994_v6 }
 0x514   : > { %1917 = vmatprep.subr.mxu0 %v2115_v1 }
 0x517   : > { %v1231_v8 = vpop.xlane.xlu1 %1230 }
 0x518   : > { %v1232_v10 = vmul.f32 0.2, %v1231_v8 }
 0x51a   : > { %v1233_v13 = vmax.f32 %v1231_v8, %v1232_v10 }
 0x51b   : > { %v668_v14 = vpop.permute.xlu1 %667 }
 0x51c   : > { %v1240_v16 = vmax.f32 %v1227_v12, %v1233_v13  ;;  %v829_v17 = vadd.f32 %v828_v11, %v668_v14 }
 0x51e   : > { %v1241_v18 = vmax.f32 %v1240_v16, %v1239_v15  ;;  %1995 = vtanh.f32 %v829_v17 }
 0x51f   : > { %v663_v19 = vpop.permute.xlu1 %662 }
 0x520   : > { %v1242_v21 = vsub.f32 %v1227_v12, %v1241_v18  ;;  %v1245_v22 = vsub.f32 %v1233_v13, %v1241_v18  ;;  %v1248_v23 = vsub.f32 %v1239_v15, %v1241_v18  ;;  %v824_v24 = vadd.f32 %v1804_v63, %v663_v19  ;;  %v1691_v18 = vld [vmem:[%s2820_s30] ss:$0 sm:$0xff]  ;;  %s2055_s30 = scalar_lea.vmem %s2054_s23, 256 }
 0x522   : > { %v1243_v26 = vmul.f32 1.442695, %v1242_v21  ;;  %v1246_v27 = vmul.f32 1.442695, %v1245_v22  ;;  %v1249_v28 = vmul.f32 1.442695, %v1248_v23  ;;  %1997 = vtanh.f32 %v824_v24 }
 0x523   : > { %v658_v29 = vpop.permute.xlu1 %657 }
 0x524   : > { %1999 = vpow2.f32 %v1243_v26  ;;  %v819_v31 = vadd.f32 %v818_v0, %v658_v29 }
 0x525   : > { %2001 = vpow2.f32 %v1246_v27 }
 0x526   : > { %2003 = vpow2.f32 %v1249_v28 }
 0x527   : > { %2005 = vtanh.f32 %v819_v31  ;;  %v653_v32 = vpop.permute.xlu1 %652 }
 0x528   : > { %v814_v33 = vadd.f32 %v1801_v60, %v653_v32 }
 0x52a   : > { %2007 = vtanh.f32 %v814_v33 }
 0x52b   : > { %v1996_v34 = vpop.eup %1995  ;;  %v648_v35 = vpop.permute.xlu1 %647 }
 0x52c   : > { %v809_v36 = vadd.f32 %v808_v61, %v648_v35  ;;  %1918 = vmatpush3.msra.mxu0 %v1996_v34 }
 0x52d   : > { %1919 = vmatprep.subr.mxu0 %v2115_v1 }
 0x52e   : > { %2009 = vtanh.f32 %v809_v36 }
 0x52f   : > { %v1998_v37 = vpop.eup %1997  ;;  %v643_v38 = vpop.permute.xlu1 %642 }
 0x530   : > { %v804_v39 = vadd.f32 %v1798_v58, %v643_v38  ;;  %1920 = vmatpush3.msra.mxu0 %v1998_v37  ;;  %v779_v58 = vadd.f32 %v2635_v52, %v618_v51  ;;  %v1695_v37 = vld [vmem:[%s2824_s3] ss:$0 sm:$0xff] }
 0x531   : > { %v2000_v41 = vpop.eup %1999  ;;  %1921 = vmatprep.subr.mxu0 %v2115_v1 }
 0x532   : > { %v2002_v42 = vpop.eup %2001  ;;  %2011 = vtanh.f32 %v804_v39 }
 0x533   : > { %v2004_v43 = vpop.eup %2003  ;;  %v1251_v44 = vadd.f32 %v2002_v42, %v2000_v41  ;;  %v638_v45 = vpop.permute.xlu1 %637 }
 0x534   : > { %v2006_v46 = vpop.eup %2005  ;;  %v799_v47 = vadd.f32 %v2656_v59, %v638_v45 }
 0x535   : > { %v1252_v48 = vadd.f32 %v2004_v43, %v1251_v44  ;;  %1922 = vmatpush3.msra.mxu0 %v2006_v46 }
 0x536   : > { %2013 = vtanh.f32 %v799_v47  ;;  %1923 = vmatprep.subr.mxu0 %v2115_v1 }
 0x537   : > { %v2008_v53 = vpop.eup %2007  ;;  %2015 = vrcp.f32 %v1252_v48  ;;  %v633_v55 = vpop.permute.xlu1 %632 }
 0x538   : > { %v794_v57 = vadd.f32 %v2642_v54, %v633_v55  ;;  %1924 = vmatpush3.msra.mxu0 %v2008_v53  ;;  %2017 = vtanh.f32 %v789_v49 }
 0x539   : > { %1925 = vmatprep.subr.mxu0 %v2115_v1 }
 0x53a   : > { %2019 = vtanh.f32 %v794_v57 }
 0x53b   : > { %v2010_v59 = vpop.eup %2009  ;;  %v623_v60 = vpop.permute.xlu1 %622  ;;  %2021 = vtanh.f32 %v779_v58 }
 0x53c   : > { %v784_v56 = vadd.f32 %v2633_v50, %v623_v60  ;;  %1926 = vmatpush3.msra.mxu0 %v2010_v59 }
 0x53d   : > { %1927 = vmatprep.subr.mxu0 %v2115_v1 }
 0x53e   : > { %2023 = vtanh.f32 %v784_v56 }
 0x53f   : > { %v2012_v61 = vpop.eup %2011 }
 0x540   : > { %1928 = vmatpush3.msra.mxu0 %v2012_v61 }
 0x541   : > { %1929 = vmatprep.subr.mxu0 %v2115_v1 }
 0x543   : > { %v2014_v54 = vpop.eup %2013 }
 0x544   : > { %v2016_v62 = vpop.eup %2015  ;;  %1930 = vmatpush3.msra.mxu0 %v2014_v54 }
 0x545   : > { %1931 = vmatprep.subr.mxu0 %v2115_v1  ;;  %v1484_v52 = vmul.f32 %v2016_v62, %v2000_v41  ;;  %v1486_v63 = vmul.f32 %v2016_v62, %v2002_v42  ;;  %v1488_v0 = vmul.f32 %v2016_v62, %v2004_v43  ;;  %v2018_v2 = vpop.eup %2017 }
 0x547   : > { %v2020_v3 = vpop.eup %2019 }
 0x548   : > { %1932 = vmatpush3.msra.mxu0 %v2020_v3  ;;  %v2022_v50 = vpop.eup %2021 }
 0x549   : > { %1933 = vmatprep.subr.mxu0 %v2115_v1 }
 0x54a   : > { %1934 = vmatpush3.msra.mxu0 %v2018_v2 }
 0x54b   : > { %v2024_v4 = vpop.eup %2023  ;;  %1935 = vmatprep.subr.mxu0 %v2115_v1 }
 0x54c   : > { %1936 = vmatpush3.msra.mxu0 %v2024_v4 }
 0x54d   : > { %1937 = vmatprep.subr.mxu0 %v2115_v1 }
 0x54e   : > { %1938 = vmatpush3.msra.mxu0 %v2022_v50 }
 0x59e   : > { %v1353_v6 = vpop.f32.mrf.mxu0 }
 0x59f   : > { %v1354_v7 = vadd.f32 %v1687_v5, %v1353_v6 }
 0x5a0   : > { %v1871_v8 = vpop.f32.mrf.mxu0 }
 0x5a1   : > { %v1367_v9 = vmax.f32 %v1354_v7, 0.0 }
 0x5a2   : > { %v1358_v10 = vpop.f32.mrf.mxu0 }
 0x5a3   : > { %v1359_v11 = vadd.f32 %v1687_v5, %v1358_v10  ;;  %1907 = vmatmul.mubr.msk.f32.vlgmr.msra.gmra.mxu1 %vm1391_vm5, %v1367_v9 }
 0x5a4   : > { %v1874_v12 = vpop.f32.mrf.mxu0  ;;  %1909 = vmatprep.mubr.msk.f32.mxu1 %vm2116_vm0, %v2115_v1 }
 0x5a5   : > { %v1368_v13 = vmax.f32 %v1359_v11, 0.0 }
 0x5a6   : > { %v1363_v14 = vpop.f32.mrf.mxu0 }
 0x5a7   : > { %v1364_v15 = vadd.f32 %v1687_v5, %v1363_v14  ;;  %1910 = vmatmul.mubr.msk.f32.gmra.mxu1 %vm1391_vm5, %v1368_v13 }
 0x5a8   : > { %v1877_v16 = vpop.f32.mrf.mxu0  ;;  %1912 = vmatprep.mubr.msk.f32.mxu1 %vm2116_vm0, %v2115_v1 }
 0x5a9   : > { %v1369_v17 = vmax.f32 %v1364_v15, 0.0 }
 0x5ab   : > { %1913 = vmatmul.mubr.msk.f32.gmra.mxu1 %vm1391_vm5, %v1369_v17 }
 0x663   : > { %v1467_v19 = vpop.f32.mrf.mxu1 }
 0x664   : > { %v1468_v20 = vadd.f32 %v1691_v18, %v1467_v19 }
 0x665   : > { %v1908_v21 = vpop.f32.mrf.mxu1 }
 0x666   : > { %v1481_v22 = vmax.f32 %v1468_v20, 0.0 }
 0x667   : > { %v1472_v23 = vpop.f32.mrf.mxu1 }
 0x668   : > { %v1485_v24 = vmul.f32 %v1484_v52, %v1481_v22  ;;  %v1473_v25 = vadd.f32 %v1691_v18, %v1472_v23 }
 0x669   : > { %v1911_v26 = vpop.f32.mrf.mxu1 }
 0x66a   : > { %v1482_v27 = vmax.f32 %v1473_v25, 0.0 }
 0x66b   : > { %v1477_v28 = vpop.f32.mrf.mxu1 }
 0x66c   : > { %v1487_v29 = vmul.f32 %v1486_v63, %v1482_v27  ;;  %v1478_v1 = vadd.f32 %v1691_v18, %v1477_v28 }
 0x66d   : > { %v1914_v30 = vpop.f32.mrf.mxu1 }
 0x66e   : > { %v1483_v31 = vmax.f32 %v1478_v1, 0.0  ;;  %1491 = vrot.lane.b32.xlu1 %v1487_v29, %s2120_s17  ;;  %s511_s17 = scalar_lea.vmem [#allocation7], %s1662_s8 }
 0x66f   : > { %s1596_s28 = sshll.u32 %s511_s17, 4  ;;  %s1597_s28 = int_to_ptr.vmem [resolvable:$true] %s1596_s28 }
 0x670   : > { %v1489_v32 = vmul.f32 %v1488_v0, %v1483_v31  ;;  %s2049_s14 = scalar_lea.vmem %s1597_s28, 128  ;;  %p2056_p9 = scmp.lt.s32.totalorder %s1597_s28, %s2054_s23 }
 0x671   : > { %p2050_p6 = scmp.ne.s32.totalorder %s1597_s28, %s2049_s14  ;;  %p2057_p10 = scmp.lt.s32.totalorder %s2055_s30, %s2049_s14 }
 0x672   : > { %1495 = vrot.lane.b32.xlu0 %v1489_v32, %s2117_s19 }
 0x673   : > { %p2051_p7 = pnand %p2050_p6, %p2261_p1  ;;  %p2058_p11 = por %p2057_p10, %p2056_p9 }
 0x675   : > { %p2052_p8 = pneg %p2051_p7 }
 0x677   : > { %p2059_p12 = pnand %p2058_p11, %p2052_p8 }
 0x6e0   : > { %v1492_v33 = vpop.permute.xlu1 %1491 }
 0x6e1   : > { %v1498_v34 = vsel %vm675_vm2, %v1485_v24, %v1492_v33 }
 0x6e4   : > { %v1496_v35 = vpop.permute.xlu0 %1495 }
 0x6e5   : > { %v1499_v36 = vsel %vm1277_vm4, %v1498_v34, %v1496_v35 }
 0x6e6   : > { %1940 = vmatmul.mubr.msk.f32.vlgmr.msra.gmra.mxu0 %vm1507_vm6, %v1499_v36 }
 0x7a6   : > { %v1577_v38 = vpop.f32.mrf.mxu0 }
 0x7a7   : > { %v1578_v39 = vadd.f32 %v1695_v37, %v1577_v38 }
 0x7a8   : > { %v1941_v40 = vpop.f32.mrf.mxu0 }
 0x7a9   : > { %1581 = vst [vmem:[%s511_s17] sm:$0xff] %v1578_v39 }
 0x7aa   : > { %2062 = shalt.err (!%p2059_p12)
}
 0x7ab   : > { %s2063_s26 = scalar_lea.hbm %s2707_s20, 128  ;;  %s2067_s8 = scalar_lea.hbm %s2825_s29, 256 }
 0x7ac   : > { %p2064_p13 = scmp.ne.s32.totalorder %s2707_s20, %s2063_s26  ;;  %p2068_p4 = scmp.lt.s32.totalorder %s2707_s20, %s2825_s29 }
 0x7ad   : > { %p2069_p5 = scmp.lt.s32.totalorder %s2067_s8, %s2063_s26 }
 0x7ae   : > { %p2065_p0 = pnand %p2064_p13, %p2261_p1 }
 0x7af   : > { %p2070_p6 = por %p2069_p5, %p2068_p4 }
 0x7b0   : > { %p2066_p3 = pneg %p2065_p0 }
 0x7b2   : > { %p2071_p7 = pnand %p2070_p6, %p2066_p3 }
 0x7b4   : > { %2074 = shalt.err (!%p2071_p7)
}
 0x7b5   : > { %1942 = dma.vmem_to_hbm [thread:$0]  (%p2261_p1), %s1597_s28, 128, %s2707_s20, %s1583_s15  }
 0x7b6 PF: > { %s2826_s3 = sld [smem:[#allocation14_spill]] }
 0x7b7   : > { %s2827_s16 = sld [smem:[#allocation11_spill]] }
 0x7bc   : > { %p1948_p8 = scmp.ge.s32.totalorder %s2826_s3, 2 }
 0x7bd   : > { %s1608_s19 = sand.u32 1, %s2827_s16  }
 0x7be   : > { %p1945_p9 = pnand %p1948_p8, %p2265_p2  ;;  %s1609_s27 = scalar_lea.sflag [#allocation8], %s1608_s19 }
 0x7c0   : > { %p1946_p10 = pneg %p1945_p9 }
 0x7c2   : > { %2094 = dma.done.wait (%p1946_p10), %s1609_s27, 128  }
 0x7c3   : > { %2096 = vsyncadd (%p1946_p10), %s1609_s27, 4294967168  ;;  %s2829_s8 = sld [smem:[#allocation16_spill]] }
 0x7c4   : > { %s2830_s1 = sld [smem:[#allocation12_spill]] }
 0x7c5   : > { %s2831_s3 = sld [smem:[#allocation13_spill]] }
 0x7c6   : > { %s2832_s23 = sld [smem:[#allocation17_spill]] }
 0x7c9   : > { %p38_p11 = scmp.ge.s32.totalorder %s2829_s8, 4  }
 0x7cb   :  { %40 = sbr.rel (!%p38_p11) target bundleno = 45 (0x2d), region = 132 }
 0x7d0   :  { %1614 = vsyncpa [#allocation8], 1 }
 0x7d1   :  { %1616 = vsyncpa [#allocation8 + $0x1], 1 }

</bundles_post_ra>
